<compile_context>
chip_gen: v6e
topology: v6e:2x2x1
jax: 0.10.0
libtpu: 0.0.40
codegen_flags: <defaults>
</compile_context>

<pallas_src>
import functools

import jax
import jax.numpy as jnp
from jax.experimental import pallas as pl
from jax.experimental.pallas import tpu as pltpu


def _round_up(x, m):
    return (x + m - 1) // m * m


# ---------------------------------------------------------------------------
# Fused Bottleneck kernel (one grid step == one image)
# ---------------------------------------------------------------------------
def _bottleneck_kernel(xph_ref, mask_ref, xs_ref, w1_ref, w2_ref, w3_ref,
                       ws_ref, sb_ref, o_ref, *, s, Wph, L0, has_proj):
    f32 = jnp.float32
    s1, b1 = sb_ref[0:1, :], sb_ref[1:2, :]
    s2, b2 = sb_ref[2:3, :], sb_ref[3:4, :]
    s3, b3 = sb_ref[4:5, :], sb_ref[5:6, :]
    ss, bs = sb_ref[6:7, :], sb_ref[7:8, :]

    # ---- conv1 (1x1) + bn1 + relu, per spatial phase (stays in VMEM) --------
    w1 = w1_ref[...]
    h_phases = []
    for ph in range(s * s):
        h = jnp.dot(xph_ref[ph], w1, preferred_element_type=f32)
        h = jnp.maximum(h * s1 + b1, 0.0) * mask_ref[ph]
        h_phases.append(h.astype(jnp.bfloat16))

    # ---- conv2 (3x3, stride s) + bn2 + relu: 9 shifted matmul-accumulates ---
    acc = None
    for kh in range(3):
        for kw in range(3):
            ph = (kh % s) * s + (kw % s)
            shift = (kh // s) * Wph + (kw // s)
            lhs = h_phases[ph][shift:shift + L0, :]
            contrib = jnp.dot(lhs, w2_ref[kh * 3 + kw],
                              preferred_element_type=f32)
            acc = contrib if acc is None else acc + contrib
    h2 = jnp.maximum(acc * s2 + b2, 0.0).astype(jnp.bfloat16)

    # ---- conv3 (1x1, bias folded) + bn3 + shortcut + relu (fused epilogue) ---
    out = jnp.dot(h2, w3_ref[...], preferred_element_type=f32) * s3 + b3
    if has_proj:
        res = jnp.dot(xs_ref[:L0, :], ws_ref[...],
                      preferred_element_type=f32) * ss + bs
    else:
        res = xs_ref[:L0, :].astype(f32)
    out = jnp.maximum(out + res, 0.0)
    o_ref[:L0, :] = out.astype(o_ref.dtype)


# ---------------------------------------------------------------------------
# Parameter folding helpers
# ---------------------------------------------------------------------------
def fold_bn(gamma, beta, mean, var, conv_bias=None, eps=1e-5):
    scale = gamma / jnp.sqrt(var + eps)
    bias = beta - mean * scale
    if conv_bias is not None:
        bias = bias + conv_bias * scale
    return scale, bias


# ---------------------------------------------------------------------------
# Wrapper: layout prep (phase decomposition, channel padding) + pallas_call
# ---------------------------------------------------------------------------
def bottleneck_forward(x_nchw, p, stride):
    bf16, f32 = jnp.bfloat16, jnp.float32
    x = jnp.transpose(x_nchw, (0, 2, 3, 1)).astype(f32)   # NHWC
    N, H, W, Cin = x.shape
    planes = p["conv1_w"].shape[0]
    Pp = _round_up(planes, 128)                            # lane-dense channels
    s = int(stride)

    Ho = (H - 1) // s + 1
    Wo = (W - 1) // s + 1
    Hp = _round_up(H + 2, s)                               # pad=1 plus phase alignment
    Wp = _round_up(W + 2, s)
    Hph, Wph = Hp // s, Wp // s
    Lph = Hph * Wph
    max_shift = (2 // s) * Wph + (2 // s)
    L0 = Lph - max_shift                                   # rows carrying valid outputs

    # Spatial zero-pad of the raw input, plus interior mask (so conv1's BN bias
    # does not leak into the conv2 padding ring).
    xpad = jnp.pad(x, ((0, 0), (1, Hp - H - 1), (1, Wp - W - 1), (0, 0)))
    maskp = jnp.pad(jnp.ones((H, W), f32), ((1, Hp - H - 1), (1, Wp - W - 1)))

    # Phase (space-to-depth) decomposition -> every in-kernel tap is unstrided.
    xph = jnp.stack([xpad[:, pr::s, pc::s, :].reshape(N, Lph, Cin)
                     for pr in range(s) for pc in range(s)], axis=1).astype(bf16)
    mph = jnp.stack([maskp[pr::s, pc::s].reshape(Lph, 1)
                     for pr in range(s) for pc in range(s)], axis=0)

    has_proj = (s != 1) or (Cin != planes)

    # Shortcut input scattered onto the same wide (Hph, Wph) grid as the output.
    xs = x[:, ::s, ::s, :]                                 # (N, Ho, Wo, Cin)
    if has_proj:
        Cs = Cin
    else:
        Cs = Pp                                            # pad channels for the direct add
        xs = jnp.pad(xs, ((0, 0), (0, 0), (0, 0), (0, Pp - Cin)))
    xs_wide = jnp.zeros((N, Hph, Wph, Cs), f32).at[:, :Ho, :Wo, :].set(xs)
    xs_wide = xs_wide.reshape(N, Lph, Cs).astype(bf16)

    # Weights (channel-padded, bf16) and folded BN scale/bias (f32).
    def pad_oc(w):
        return jnp.pad(w, ((0, 0), (0, Pp - w.shape[1])))

    w1 = pad_oc(p["conv1_w"][:, :, 0, 0].T).astype(bf16)                 # (Cin, Pp)
    w2 = jnp.stack([jnp.pad(p["conv2_w"][:, :, kh, kw].T,
                            ((0, Pp - planes), (0, Pp - planes)))
                    for kh in range(3) for kw in range(3)], 0).astype(bf16)  # (9, Pp, Pp)
    w3 = jnp.pad(p["conv3_w"][:, :, 0, 0].T,
                 ((0, Pp - planes), (0, Pp - planes))).astype(bf16)      # (Pp, Pp)

    s1, b1 = fold_bn(p["bn1_g"], p["bn1_b"], p["bn1_m"], p["bn1_v"])
    s2, b2 = fold_bn(p["bn2_g"], p["bn2_b"], p["bn2_m"], p["bn2_v"])
    s3, b3 = fold_bn(p["bn3_g"], p["bn3_b"], p["bn3_m"], p["bn3_v"],
                     conv_bias=p["conv3_b"])
    if has_proj:
        ws = pad_oc(p["sc_w"][:, :, 0, 0].T).astype(bf16)                # (Cin, Pp)
        ssc, bsc = fold_bn(p["sc_bn_g"], p["sc_bn_b"], p["sc_bn_m"], p["sc_bn_v"])
    else:
        ws = jnp.zeros((Cin, Pp), bf16)                                  # unused
        ssc = jnp.zeros((planes,), f32)
        bsc = jnp.zeros((planes,), f32)

    def padv(v):
        return jnp.pad(v, (0, Pp - planes))

    sb = jnp.stack([padv(v) for v in (s1, b1, s2, b2, s3, b3, ssc, bsc)],
                   axis=0).astype(f32)                                   # (8, Pp)

    kernel = functools.partial(_bottleneck_kernel, s=s, Wph=Wph, L0=L0,
                               has_proj=has_proj)

    out_wide = pl.pallas_call(
        kernel,
        out_shape=jax.ShapeDtypeStruct((N, Lph, Pp), f32),
        grid=(N,),
        in_specs=[
            pl.BlockSpec((None, s * s, Lph, Cin), lambda n: (n, 0, 0, 0)),  # x phases
            pl.BlockSpec((s * s, Lph, 1), lambda n: (0, 0, 0)),             # masks
            pl.BlockSpec((None, Lph, Cs), lambda n: (n, 0, 0)),             # shortcut in
            pl.BlockSpec((Cin, Pp), lambda n: (0, 0)),                      # w1
            pl.BlockSpec((9, Pp, Pp), lambda n: (0, 0, 0)),                 # w2 taps
            pl.BlockSpec((Pp, Pp), lambda n: (0, 0)),                       # w3
            pl.BlockSpec((Cin, Pp), lambda n: (0, 0)),                      # ws
            pl.BlockSpec((8, Pp), lambda n: (0, 0)),                        # scales/biases
        ],
        out_specs=pl.BlockSpec((None, Lph, Pp), lambda n: (n, 0, 0)),
        compiler_params=pltpu.CompilerParams(
            dimension_semantics=("parallel",),
            vmem_limit_bytes=48 * 1024 * 1024),
    )(xph, mph, xs_wide, w1, w2, w3, ws, sb)

    # Drop the spatial over-compute margin and the channel padding; the slice
    # fuses with the final layout transpose in XLA.
    out = out_wide.reshape(N, Hph, Wph, Pp)[:, :Ho, :Wo, :planes]
    return jnp.transpose(out, (0, 3, 1, 2))                 # back to NCHW


# ---------------------------------------------------------------------------
# Pure-JAX reference (lax conv) for verification
# ---------------------------------------------------------------------------
def reference_forward(x, p, stride, eps=1e-5):
    def conv(x, w, s, pad):
        return jax.lax.conv_general_dilated(
            x, w, (s, s), pad, dimension_numbers=("NCHW", "OIHW", "NCHW"))

    def bn(x, g, b, m, v):
        g, b, m, v = (t[None, :, None, None] for t in (g, b, m, v))
        return (x - m) / jnp.sqrt(v + eps) * g + b

    in_planes = x.shape[1]
    planes = p["conv1_w"].shape[0]
    out = jax.nn.relu(bn(conv(x, p["conv1_w"], 1, "VALID"),
                         p["bn1_g"], p["bn1_b"], p["bn1_m"], p["bn1_v"]))
    out = jax.nn.relu(bn(conv(out, p["conv2_w"], stride, ((1, 1), (1, 1))),
                         p["bn2_g"], p["bn2_b"], p["bn2_m"], p["bn2_v"]))
    out = bn(conv(out, p["conv3_w"], 1, "VALID") + p["conv3_b"][None, :, None, None],
             p["bn3_g"], p["bn3_b"], p["bn3_m"], p["bn3_v"])
    if stride != 1 or in_planes != planes:
        sc = bn(conv(x, p["sc_w"], stride, "VALID"),
                p["sc_bn_g"], p["sc_bn_b"], p["sc_bn_m"], p["sc_bn_v"])
    else:
        sc = x
    return jax.nn.relu(out + sc)


# ---------------------------------------------------------------------------
# Deterministic parameter init (torch OIHW layouts)
# ---------------------------------------------------------------------------
def init_params(key, in_planes, planes):
    ks = iter(jax.random.split(key, 32))
    n = lambda shape, s=0.1: jax.random.normal(next(ks), shape, jnp.float32) * s
    u = lambda shape, lo, hi: jax.random.uniform(next(ks), shape, jnp.float32, lo, hi)
    bn = lambda c: dict(g=u((c,), 0.5, 1.5), b=n((c,)), m=n((c,)), v=u((c,), 0.5, 1.5))
    p = {}
    p["conv1_w"] = n((planes, in_planes, 1, 1))
    p["conv2_w"] = n((planes, planes, 3, 3))
    p["conv3_w"] = n((planes, planes, 1, 1))
    p["conv3_b"] = n((planes,))
    p["sc_w"] = n((planes, in_planes, 1, 1))
    for name, c in (("bn1", planes), ("bn2", planes), ("bn3", planes), ("sc_bn", planes)):
        d = bn(c)
        p[f"{name}_g"], p[f"{name}_b"] = d["g"], d["b"]
        p[f"{name}_m"], p[f"{name}_v"] = d["m"], d["v"]
    return p


if __name__ == "__main__":
    key = jax.random.PRNGKey(0)
    # (N, in_planes, planes, H, W, stride): projection-shortcut and identity paths.
    configs = [
        (2, 4, 8, 16, 16, 2),
        (2, 8, 8, 16, 16, 1),
    ]
    for idx, (N, cin, planes, H, W, stride) in enumerate(configs):
        k_x, k_p = jax.random.split(jax.random.fold_in(key, idx))
        x = jax.random.normal(k_x, (N, cin, H, W), jnp.float32)
        params = init_params(k_p, cin, planes)

        out = jax.block_until_ready(bottleneck_forward(x, params, stride))
        ref = jax.block_until_ready(reference_forward(x, params, stride))

        Ho = (H - 1) // stride + 1
        Wo = (W - 1) // stride + 1
        assert out.shape == ref.shape == (N, planes, Ho, Wo), (out.shape, ref.shape)
        max_err = float(jnp.max(jnp.abs(out - ref)))
        assert jnp.allclose(out, ref, atol=3e-2, rtol=3e-2), (idx, max_err)

    print("KERNEL_OK")
</pallas_src>

<mosaic_0001>
module attributes {stable_mosaic.version = 11 : i64} {
  func.func @_bottleneck_kernel(%arg0: i32, %arg1: memref<1x4x81x4xbf16, #tpu.memory_space<vmem>>, %arg2: memref<4x81x1xf32, #tpu.memory_space<vmem>>, %arg3: memref<1x81x4xbf16, #tpu.memory_space<vmem>>, %arg4: memref<4x128xbf16, #tpu.memory_space<vmem>>, %arg5: memref<9x128x128xbf16, #tpu.memory_space<vmem>>, %arg6: memref<128x128xbf16, #tpu.memory_space<vmem>>, %arg7: memref<4x128xbf16, #tpu.memory_space<vmem>>, %arg8: memref<8x128xf32, #tpu.memory_space<vmem>>, %arg9: memref<1x81x128xf32, #tpu.memory_space<vmem>>) attributes {dimension_semantics = [#tpu.dimension_semantics<parallel>], iteration_bounds = array<i64: 2>, scalar_prefetch = 0 : i64, scratch_operands = 0 : i64, tpu.core_type = #tpu.core_type<tc>, window_params = [{transform_indices = @transform_0, window_bounds = array<i64: 1, 4, 81, 4>}, {pipeline_mode = #tpu.pipeline_mode<synchronous>, transform_indices = @transform_1, window_bounds = array<i64: 4, 81, 1>}, {transform_indices = @transform_2, window_bounds = array<i64: 1, 81, 4>}, {pipeline_mode = #tpu.pipeline_mode<synchronous>, transform_indices = @transform_3, window_bounds = array<i64: 4, 128>}, {pipeline_mode = #tpu.pipeline_mode<synchronous>, transform_indices = @transform_4, window_bounds = array<i64: 9, 128, 128>}, {pipeline_mode = #tpu.pipeline_mode<synchronous>, transform_indices = @transform_5, window_bounds = array<i64: 128, 128>}, {pipeline_mode = #tpu.pipeline_mode<synchronous>, transform_indices = @transform_6, window_bounds = array<i64: 4, 128>}, {pipeline_mode = #tpu.pipeline_mode<synchronous>, transform_indices = @transform_7, window_bounds = array<i64: 8, 128>}, {transform_indices = @transform_8, window_bounds = array<i64: 1, 81, 128>}]} {
    %c0 = arith.constant 0 : index
    %c0_0 = arith.constant 0 : index
    %0 = vector.load %arg8[%c0, %c0_0] : memref<8x128xf32, #tpu.memory_space<vmem>>, vector<1x128xf32>
    %c1 = arith.constant 1 : index
    %c0_1 = arith.constant 0 : index
    %1 = vector.load %arg8[%c1, %c0_1] : memref<8x128xf32, #tpu.memory_space<vmem>>, vector<1x128xf32>
    %c2 = arith.constant 2 : index
    %c0_2 = arith.constant 0 : index
    %2 = vector.load %arg8[%c2, %c0_2] : memref<8x128xf32, #tpu.memory_space<vmem>>, vector<1x128xf32>
    %c3 = arith.constant 3 : index
    %c0_3 = arith.constant 0 : index
    %3 = vector.load %arg8[%c3, %c0_3] : memref<8x128xf32, #tpu.memory_space<vmem>>, vector<1x128xf32>
    %c4 = arith.constant 4 : index
    %c0_4 = arith.constant 0 : index
    %4 = vector.load %arg8[%c4, %c0_4] : memref<8x128xf32, #tpu.memory_space<vmem>>, vector<1x128xf32>
    %c5 = arith.constant 5 : index
    %c0_5 = arith.constant 0 : index
    %5 = vector.load %arg8[%c5, %c0_5] : memref<8x128xf32, #tpu.memory_space<vmem>>, vector<1x128xf32>
    %c6 = arith.constant 6 : index
    %c0_6 = arith.constant 0 : index
    %6 = vector.load %arg8[%c6, %c0_6] : memref<8x128xf32, #tpu.memory_space<vmem>>, vector<1x128xf32>
    %c7 = arith.constant 7 : index
    %c0_7 = arith.constant 0 : index
    %7 = vector.load %arg8[%c7, %c0_7] : memref<8x128xf32, #tpu.memory_space<vmem>>, vector<1x128xf32>
    %c0_8 = arith.constant 0 : index
    %c0_9 = arith.constant 0 : index
    %8 = vector.load %arg4[%c0_8, %c0_9] : memref<4x128xbf16, #tpu.memory_space<vmem>>, vector<4x128xbf16>
    %c0_10 = arith.constant 0 : index
    %c0_11 = arith.constant 0 : index
    %c0_12 = arith.constant 0 : index
    %c0_13 = arith.constant 0 : index
    %9 = vector.load %arg1[%c0_10, %c0_11, %c0_12, %c0_13] : memref<1x4x81x4xbf16, #tpu.memory_space<vmem>>, vector<1x1x81x4xbf16>
    %10 = vector.shape_cast %9 : vector<1x1x81x4xbf16> to vector<81x4xbf16>
    %cst = arith.constant dense<0.000000e+00> : vector<81x128xf32>
    %11 = tpu.matmul %10, %8, %cst {dimension_numbers = #tpu.dot_dimension_numbers<[1], [0], [0], [1], [0, 0, 1, 1], [], []>} : vector<81x4xbf16>, vector<4x128xbf16>, vector<81x128xf32> -> vector<81x128xf32>
    %12 = vector.broadcast %0 : vector<1x128xf32> to vector<81x128xf32>
    %13 = arith.mulf %11, %12 : vector<81x128xf32>
    %14 = vector.broadcast %1 : vector<1x128xf32> to vector<81x128xf32>
    %15 = arith.addf %13, %14 : vector<81x128xf32>
    %cst_14 = arith.constant 0.000000e+00 : f32
    %16 = vector.broadcast %cst_14 : f32 to vector<81x128xf32>
    %17 = arith.maximumf %15, %16 : vector<81x128xf32>
    %c0_15 = arith.constant 0 : index
    %c0_16 = arith.constant 0 : index
    %c0_17 = arith.constant 0 : index
    %18 = vector.load %arg2[%c0_15, %c0_16, %c0_17] : memref<4x81x1xf32, #tpu.memory_space<vmem>>, vector<1x81x1xf32>
    %19 = vector.shape_cast %18 : vector<1x81x1xf32> to vector<81x1xf32>
    %20 = vector.broadcast %19 : vector<81x1xf32> to vector<81x128xf32>
    %21 = arith.mulf %17, %20 : vector<81x128xf32>
    %22 = arith.truncf %21 : vector<81x128xf32> to vector<81x128xbf16>
    %c0_18 = arith.constant 0 : index
    %c1_19 = arith.constant 1 : index
    %c0_20 = arith.constant 0 : index
    %c0_21 = arith.constant 0 : index
    %23 = vector.load %arg1[%c0_18, %c1_19, %c0_20, %c0_21] : memref<1x4x81x4xbf16, #tpu.memory_space<vmem>>, vector<1x1x81x4xbf16>
    %24 = vector.shape_cast %23 : vector<1x1x81x4xbf16> to vector<81x4xbf16>
    %cst_22 = arith.constant dense<0.000000e+00> : vector<81x128xf32>
    %25 = tpu.matmul %24, %8, %cst_22 {dimension_numbers = #tpu.dot_dimension_numbers<[1], [0], [0], [1], [0, 0, 1, 1], [], []>} : vector<81x4xbf16>, vector<4x128xbf16>, vector<81x128xf32> -> vector<81x128xf32>
    %26 = vector.broadcast %0 : vector<1x128xf32> to vector<81x128xf32>
    %27 = arith.mulf %25, %26 : vector<81x128xf32>
    %28 = vector.broadcast %1 : vector<1x128xf32> to vector<81x128xf32>
    %29 = arith.addf %27, %28 : vector<81x128xf32>
    %cst_23 = arith.constant 0.000000e+00 : f32
    %30 = vector.broadcast %cst_23 : f32 to vector<81x128xf32>
    %31 = arith.maximumf %29, %30 : vector<81x128xf32>
    %c1_24 = arith.constant 1 : index
    %c0_25 = arith.constant 0 : index
    %c0_26 = arith.constant 0 : index
    %32 = vector.load %arg2[%c1_24, %c0_25, %c0_26] : memref<4x81x1xf32, #tpu.memory_space<vmem>>, vector<1x81x1xf32>
    %33 = vector.shape_cast %32 : vector<1x81x1xf32> to vector<81x1xf32>
    %34 = vector.broadcast %33 : vector<81x1xf32> to vector<81x128xf32>
    %35 = arith.mulf %31, %34 : vector<81x128xf32>
    %36 = arith.truncf %35 : vector<81x128xf32> to vector<81x128xbf16>
    %c0_27 = arith.constant 0 : index
    %c2_28 = arith.constant 2 : index
    %c0_29 = arith.constant 0 : index
    %c0_30 = arith.constant 0 : index
    %37 = vector.load %arg1[%c0_27, %c2_28, %c0_29, %c0_30] : memref<1x4x81x4xbf16, #tpu.memory_space<vmem>>, vector<1x1x81x4xbf16>
    %38 = vector.shape_cast %37 : vector<1x1x81x4xbf16> to vector<81x4xbf16>
    %cst_31 = arith.constant dense<0.000000e+00> : vector<81x128xf32>
    %39 = tpu.matmul %38, %8, %cst_31 {dimension_numbers = #tpu.dot_dimension_numbers<[1], [0], [0], [1], [0, 0, 1, 1], [], []>} : vector<81x4xbf16>, vector<4x128xbf16>, vector<81x128xf32> -> vector<81x128xf32>
    %40 = vector.broadcast %0 : vector<1x128xf32> to vector<81x128xf32>
    %41 = arith.mulf %39, %40 : vector<81x128xf32>
    %42 = vector.broadcast %1 : vector<1x128xf32> to vector<81x128xf32>
    %43 = arith.addf %41, %42 : vector<81x128xf32>
    %cst_32 = arith.constant 0.000000e+00 : f32
    %44 = vector.broadcast %cst_32 : f32 to vector<81x128xf32>
    %45 = arith.maximumf %43, %44 : vector<81x128xf32>
    %c2_33 = arith.constant 2 : index
    %c0_34 = arith.constant 0 : index
    %c0_35 = arith.constant 0 : index
    %46 = vector.load %arg2[%c2_33, %c0_34, %c0_35] : memref<4x81x1xf32, #tpu.memory_space<vmem>>, vector<1x81x1xf32>
    %47 = vector.shape_cast %46 : vector<1x81x1xf32> to vector<81x1xf32>
    %48 = vector.broadcast %47 : vector<81x1xf32> to vector<81x128xf32>
    %49 = arith.mulf %45, %48 : vector<81x128xf32>
    %50 = arith.truncf %49 : vector<81x128xf32> to vector<81x128xbf16>
    %c0_36 = arith.constant 0 : index
    %c3_37 = arith.constant 3 : index
    %c0_38 = arith.constant 0 : index
    %c0_39 = arith.constant 0 : index
    %51 = vector.load %arg1[%c0_36, %c3_37, %c0_38, %c0_39] : memref<1x4x81x4xbf16, #tpu.memory_space<vmem>>, vector<1x1x81x4xbf16>
    %52 = vector.shape_cast %51 : vector<1x1x81x4xbf16> to vector<81x4xbf16>
    %cst_40 = arith.constant dense<0.000000e+00> : vector<81x128xf32>
    %53 = tpu.matmul %52, %8, %cst_40 {dimension_numbers = #tpu.dot_dimension_numbers<[1], [0], [0], [1], [0, 0, 1, 1], [], []>} : vector<81x4xbf16>, vector<4x128xbf16>, vector<81x128xf32> -> vector<81x128xf32>
    %54 = vector.broadcast %0 : vector<1x128xf32> to vector<81x128xf32>
    %55 = arith.mulf %53, %54 : vector<81x128xf32>
    %56 = vector.broadcast %1 : vector<1x128xf32> to vector<81x128xf32>
    %57 = arith.addf %55, %56 : vector<81x128xf32>
    %cst_41 = arith.constant 0.000000e+00 : f32
    %58 = vector.broadcast %cst_41 : f32 to vector<81x128xf32>
    %59 = arith.maximumf %57, %58 : vector<81x128xf32>
    %c3_42 = arith.constant 3 : index
    %c0_43 = arith.constant 0 : index
    %c0_44 = arith.constant 0 : index
    %60 = vector.load %arg2[%c3_42, %c0_43, %c0_44] : memref<4x81x1xf32, #tpu.memory_space<vmem>>, vector<1x81x1xf32>
    %61 = vector.shape_cast %60 : vector<1x81x1xf32> to vector<81x1xf32>
    %62 = vector.broadcast %61 : vector<81x1xf32> to vector<81x128xf32>
    %63 = arith.mulf %59, %62 : vector<81x128xf32>
    %64 = arith.truncf %63 : vector<81x128xf32> to vector<81x128xbf16>
    %65 = vector.extract_strided_slice %22 {offsets = [0, 0], sizes = [71, 128], strides = [1, 1]} : vector<81x128xbf16> to vector<71x128xbf16>
    %c0_45 = arith.constant 0 : index
    %c0_46 = arith.constant 0 : index
    %c0_47 = arith.constant 0 : index
    %66 = vector.load %arg5[%c0_45, %c0_46, %c0_47] : memref<9x128x128xbf16, #tpu.memory_space<vmem>>, vector<1x128x128xbf16>
    %67 = vector.shape_cast %66 : vector<1x128x128xbf16> to vector<128x128xbf16>
    %cst_48 = arith.constant dense<0.000000e+00> : vector<71x128xf32>
    %68 = tpu.matmul %65, %67, %cst_48 {dimension_numbers = #tpu.dot_dimension_numbers<[1], [0], [0], [1], [0, 0, 1, 1], [], []>} : vector<71x128xbf16>, vector<128x128xbf16>, vector<71x128xf32> -> vector<71x128xf32>
    %69 = vector.extract_strided_slice %36 {offsets = [0, 0], sizes = [71, 128], strides = [1, 1]} : vector<81x128xbf16> to vector<71x128xbf16>
    %c1_49 = arith.constant 1 : index
    %c0_50 = arith.constant 0 : index
    %c0_51 = arith.constant 0 : index
    %70 = vector.load %arg5[%c1_49, %c0_50, %c0_51] : memref<9x128x128xbf16, #tpu.memory_space<vmem>>, vector<1x128x128xbf16>
    %71 = vector.shape_cast %70 : vector<1x128x128xbf16> to vector<128x128xbf16>
    %cst_52 = arith.constant dense<0.000000e+00> : vector<71x128xf32>
    %72 = tpu.matmul %69, %71, %cst_52 {dimension_numbers = #tpu.dot_dimension_numbers<[1], [0], [0], [1], [0, 0, 1, 1], [], []>} : vector<71x128xbf16>, vector<128x128xbf16>, vector<71x128xf32> -> vector<71x128xf32>
    %73 = arith.addf %68, %72 : vector<71x128xf32>
    %74 = vector.extract_strided_slice %22 {offsets = [1, 0], sizes = [71, 128], strides = [1, 1]} : vector<81x128xbf16> to vector<71x128xbf16>
    %c2_53 = arith.constant 2 : index
    %c0_54 = arith.constant 0 : index
    %c0_55 = arith.constant 0 : index
    %75 = vector.load %arg5[%c2_53, %c0_54, %c0_55] : memref<9x128x128xbf16, #tpu.memory_space<vmem>>, vector<1x128x128xbf16>
    %76 = vector.shape_cast %75 : vector<1x128x128xbf16> to vector<128x128xbf16>
    %cst_56 = arith.constant dense<0.000000e+00> : vector<71x128xf32>
    %77 = tpu.matmul %74, %76, %cst_56 {dimension_numbers = #tpu.dot_dimension_numbers<[1], [0], [0], [1], [0, 0, 1, 1], [], []>} : vector<71x128xbf16>, vector<128x128xbf16>, vector<71x128xf32> -> vector<71x128xf32>
    %78 = arith.addf %73, %77 : vector<71x128xf32>
    %79 = vector.extract_strided_slice %50 {offsets = [0, 0], sizes = [71, 128], strides = [1, 1]} : vector<81x128xbf16> to vector<71x128xbf16>
    %c3_57 = arith.constant 3 : index
    %c0_58 = arith.constant 0 : index
    %c0_59 = arith.constant 0 : index
    %80 = vector.load %arg5[%c3_57, %c0_58, %c0_59] : memref<9x128x128xbf16, #tpu.memory_space<vmem>>, vector<1x128x128xbf16>
    %81 = vector.shape_cast %80 : vector<1x128x128xbf16> to vector<128x128xbf16>
    %cst_60 = arith.constant dense<0.000000e+00> : vector<71x128xf32>
    %82 = tpu.matmul %79, %81, %cst_60 {dimension_numbers = #tpu.dot_dimension_numbers<[1], [0], [0], [1], [0, 0, 1, 1], [], []>} : vector<71x128xbf16>, vector<128x128xbf16>, vector<71x128xf32> -> vector<71x128xf32>
    %83 = arith.addf %78, %82 : vector<71x128xf32>
    %84 = vector.extract_strided_slice %64 {offsets = [0, 0], sizes = [71, 128], strides = [1, 1]} : vector<81x128xbf16> to vector<71x128xbf16>
    %c4_61 = arith.constant 4 : index
    %c0_62 = arith.constant 0 : index
    %c0_63 = arith.constant 0 : index
    %85 = vector.load %arg5[%c4_61, %c0_62, %c0_63] : memref<9x128x128xbf16, #tpu.memory_space<vmem>>, vector<1x128x128xbf16>
    %86 = vector.shape_cast %85 : vector<1x128x128xbf16> to vector<128x128xbf16>
    %cst_64 = arith.constant dense<0.000000e+00> : vector<71x128xf32>
    %87 = tpu.matmul %84, %86, %cst_64 {dimension_numbers = #tpu.dot_dimension_numbers<[1], [0], [0], [1], [0, 0, 1, 1], [], []>} : vector<71x128xbf16>, vector<128x128xbf16>, vector<71x128xf32> -> vector<71x128xf32>
    %88 = arith.addf %83, %87 : vector<71x128xf32>
    %89 = vector.extract_strided_slice %50 {offsets = [1, 0], sizes = [71, 128], strides = [1, 1]} : vector<81x128xbf16> to vector<71x128xbf16>
    %c5_65 = arith.constant 5 : index
    %c0_66 = arith.constant 0 : index
    %c0_67 = arith.constant 0 : index
    %90 = vector.load %arg5[%c5_65, %c0_66, %c0_67] : memref<9x128x128xbf16, #tpu.memory_space<vmem>>, vector<1x128x128xbf16>
    %91 = vector.shape_cast %90 : vector<1x128x128xbf16> to vector<128x128xbf16>
    %cst_68 = arith.constant dense<0.000000e+00> : vector<71x128xf32>
    %92 = tpu.matmul %89, %91, %cst_68 {dimension_numbers = #tpu.dot_dimension_numbers<[1], [0], [0], [1], [0, 0, 1, 1], [], []>} : vector<71x128xbf16>, vector<128x128xbf16>, vector<71x128xf32> -> vector<71x128xf32>
    %93 = arith.addf %88, %92 : vector<71x128xf32>
    %94 = vector.extract_strided_slice %22 {offsets = [9, 0], sizes = [71, 128], strides = [1, 1]} : vector<81x128xbf16> to vector<71x128xbf16>
    %c6_69 = arith.constant 6 : index
    %c0_70 = arith.constant 0 : index
    %c0_71 = arith.constant 0 : index
    %95 = vector.load %arg5[%c6_69, %c0_70, %c0_71] : memref<9x128x128xbf16, #tpu.memory_space<vmem>>, vector<1x128x128xbf16>
    %96 = vector.shape_cast %95 : vector<1x128x128xbf16> to vector<128x128xbf16>
    %cst_72 = arith.constant dense<0.000000e+00> : vector<71x128xf32>
    %97 = tpu.matmul %94, %96, %cst_72 {dimension_numbers = #tpu.dot_dimension_numbers<[1], [0], [0], [1], [0, 0, 1, 1], [], []>} : vector<71x128xbf16>, vector<128x128xbf16>, vector<71x128xf32> -> vector<71x128xf32>
    %98 = arith.addf %93, %97 : vector<71x128xf32>
    %99 = vector.extract_strided_slice %36 {offsets = [9, 0], sizes = [71, 128], strides = [1, 1]} : vector<81x128xbf16> to vector<71x128xbf16>
    %c7_73 = arith.constant 7 : index
    %c0_74 = arith.constant 0 : index
    %c0_75 = arith.constant 0 : index
    %100 = vector.load %arg5[%c7_73, %c0_74, %c0_75] : memref<9x128x128xbf16, #tpu.memory_space<vmem>>, vector<1x128x128xbf16>
    %101 = vector.shape_cast %100 : vector<1x128x128xbf16> to vector<128x128xbf16>
    %cst_76 = arith.constant dense<0.000000e+00> : vector<71x128xf32>
    %102 = tpu.matmul %99, %101, %cst_76 {dimension_numbers = #tpu.dot_dimension_numbers<[1], [0], [0], [1], [0, 0, 1, 1], [], []>} : vector<71x128xbf16>, vector<128x128xbf16>, vector<71x128xf32> -> vector<71x128xf32>
    %103 = arith.addf %98, %102 : vector<71x128xf32>
    %104 = vector.extract_strided_slice %22 {offsets = [10, 0], sizes = [71, 128], strides = [1, 1]} : vector<81x128xbf16> to vector<71x128xbf16>
    %c8 = arith.constant 8 : index
    %c0_77 = arith.constant 0 : index
    %c0_78 = arith.constant 0 : index
    %105 = vector.load %arg5[%c8, %c0_77, %c0_78] : memref<9x128x128xbf16, #tpu.memory_space<vmem>>, vector<1x128x128xbf16>
    %106 = vector.shape_cast %105 : vector<1x128x128xbf16> to vector<128x128xbf16>
    %cst_79 = arith.constant dense<0.000000e+00> : vector<71x128xf32>
    %107 = tpu.matmul %104, %106, %cst_79 {dimension_numbers = #tpu.dot_dimension_numbers<[1], [0], [0], [1], [0, 0, 1, 1], [], []>} : vector<71x128xbf16>, vector<128x128xbf16>, vector<71x128xf32> -> vector<71x128xf32>
    %108 = arith.addf %103, %107 : vector<71x128xf32>
    %109 = vector.broadcast %2 : vector<1x128xf32> to vector<71x128xf32>
    %110 = arith.mulf %108, %109 : vector<71x128xf32>
    %111 = vector.broadcast %3 : vector<1x128xf32> to vector<71x128xf32>
    %112 = arith.addf %110, %111 : vector<71x128xf32>
    %cst_80 = arith.constant 0.000000e+00 : f32
    %113 = vector.broadcast %cst_80 : f32 to vector<71x128xf32>
    %114 = arith.maximumf %112, %113 : vector<71x128xf32>
    %115 = arith.truncf %114 : vector<71x128xf32> to vector<71x128xbf16>
    %c0_81 = arith.constant 0 : index
    %c0_82 = arith.constant 0 : index
    %116 = vector.load %arg6[%c0_81, %c0_82] : memref<128x128xbf16, #tpu.memory_space<vmem>>, vector<128x128xbf16>
    %cst_83 = arith.constant dense<0.000000e+00> : vector<71x128xf32>
    %117 = tpu.matmul %115, %116, %cst_83 {dimension_numbers = #tpu.dot_dimension_numbers<[1], [0], [0], [1], [0, 0, 1, 1], [], []>} : vector<71x128xbf16>, vector<128x128xbf16>, vector<71x128xf32> -> vector<71x128xf32>
    %118 = vector.broadcast %4 : vector<1x128xf32> to vector<71x128xf32>
    %119 = arith.mulf %117, %118 : vector<71x128xf32>
    %120 = vector.broadcast %5 : vector<1x128xf32> to vector<71x128xf32>
    %121 = arith.addf %119, %120 : vector<71x128xf32>
    %c0_84 = arith.constant 0 : index
    %c0_85 = arith.constant 0 : index
    %c0_86 = arith.constant 0 : index
    %122 = vector.load %arg3[%c0_84, %c0_85, %c0_86] : memref<1x81x4xbf16, #tpu.memory_space<vmem>>, vector<1x71x4xbf16>
    %123 = vector.shape_cast %122 : vector<1x71x4xbf16> to vector<71x4xbf16>
    %c0_87 = arith.constant 0 : index
    %c0_88 = arith.constant 0 : index
    %124 = vector.load %arg7[%c0_87, %c0_88] : memref<4x128xbf16, #tpu.memory_space<vmem>>, vector<4x128xbf16>
    %cst_89 = arith.constant dense<0.000000e+00> : vector<71x128xf32>
    %125 = tpu.matmul %123, %124, %cst_89 {dimension_numbers = #tpu.dot_dimension_numbers<[1], [0], [0], [1], [0, 0, 1, 1], [], []>} : vector<71x4xbf16>, vector<4x128xbf16>, vector<71x128xf32> -> vector<71x128xf32>
    %126 = vector.broadcast %6 : vector<1x128xf32> to vector<71x128xf32>
    %127 = arith.mulf %125, %126 : vector<71x128xf32>
    %128 = vector.broadcast %7 : vector<1x128xf32> to vector<71x128xf32>
    %129 = arith.addf %127, %128 : vector<71x128xf32>
    %130 = arith.addf %121, %129 : vector<71x128xf32>
    %cst_90 = arith.constant 0.000000e+00 : f32
    %131 = vector.broadcast %cst_90 : f32 to vector<71x128xf32>
    %132 = arith.maximumf %130, %131 : vector<71x128xf32>
    %c0_91 = arith.constant 0 : index
    %c0_92 = arith.constant 0 : index
    %c0_93 = arith.constant 0 : index
    %133 = vector.load %arg9[%c0_91, %c0_92, %c0_93] : memref<1x81x128xf32, #tpu.memory_space<vmem>>, vector<1x71x128xf32>
    %134 = vector.shape_cast %133 : vector<1x71x128xf32> to vector<71x128xf32>
    %135 = vector.shape_cast %132 : vector<71x128xf32> to vector<1x71x128xf32>
    tpu.vector_store %arg9[%c0_91, %c0_92, %c0_93], %135 {strides = array<i32>} : memref<1x81x128xf32, #tpu.memory_space<vmem>>, vector<1x71x128xf32>,
    return
  }
  func.func @transform_0(%arg0: i32) -> (i32, i32, i32, i32) {
    %c0_i32 = arith.constant 0 : i32
    %c0_i32_0 = arith.constant 0 : i32
    %c0_i32_1 = arith.constant 0 : i32
    %c0_i32_2 = arith.constant 0 : i32
    return %arg0, %c0_i32, %c0_i32_0, %c0_i32_1 : i32, i32, i32, i32
  }
  func.func @transform_1(%arg0: i32) -> (i32, i32, i32) {
    %c0_i32 = arith.constant 0 : i32
    %c0_i32_0 = arith.constant 0 : i32
    %c0_i32_1 = arith.constant 0 : i32
    %c0_i32_2 = arith.constant 0 : i32
    return %c0_i32, %c0_i32_0, %c0_i32_1 : i32, i32, i32
  }
  func.func @transform_2(%arg0: i32) -> (i32, i32, i32) {
    %c0_i32 = arith.constant 0 : i32
    %c0_i32_0 = arith.constant 0 : i32
    %c0_i32_1 = arith.constant 0 : i32
    return %arg0, %c0_i32, %c0_i32_0 : i32, i32, i32
  }
  func.func @transform_3(%arg0: i32) -> (i32, i32) {
    %c0_i32 = arith.constant 0 : i32
    %c0_i32_0 = arith.constant 0 : i32
    %c0_i32_1 = arith.constant 0 : i32
    return %c0_i32, %c0_i32_0 : i32, i32
  }
  func.func @transform_4(%arg0: i32) -> (i32, i32, i32) {
    %c0_i32 = arith.constant 0 : i32
    %c0_i32_0 = arith.constant 0 : i32
    %c0_i32_1 = arith.constant 0 : i32
    %c0_i32_2 = arith.constant 0 : i32
    return %c0_i32, %c0_i32_0, %c0_i32_1 : i32, i32, i32
  }
  func.func @transform_5(%arg0: i32) -> (i32, i32) {
    %c0_i32 = arith.constant 0 : i32
    %c0_i32_0 = arith.constant 0 : i32
    %c0_i32_1 = arith.constant 0 : i32
    return %c0_i32, %c0_i32_0 : i32, i32
  }
  func.func @transform_6(%arg0: i32) -> (i32, i32) {
    %c0_i32 = arith.constant 0 : i32
    %c0_i32_0 = arith.constant 0 : i32
    %c0_i32_1 = arith.constant 0 : i32
    return %c0_i32, %c0_i32_0 : i32, i32
  }
  func.func @transform_7(%arg0: i32) -> (i32, i32) {
    %c0_i32 = arith.constant 0 : i32
    %c0_i32_0 = arith.constant 0 : i32
    %c0_i32_1 = arith.constant 0 : i32
    return %c0_i32, %c0_i32_0 : i32, i32
  }
  func.func @transform_8(%arg0: i32) -> (i32, i32, i32) {
    %c0_i32 = arith.constant 0 : i32
    %c0_i32_0 = arith.constant 0 : i32
    %c0_i32_1 = arith.constant 0 : i32
    return %arg0, %c0_i32, %c0_i32_0 : i32, i32, i32
  }
}

</mosaic_0001>

<bundles_post_ra>
// kernel: tpu_custom_call.1
= control target key start
LH: loop header
LB: loop body
LE: loop exit
PB: predicated region body
PF: predicated region fallthrough
CT: control target
= control target key end

     0   :  { %s4393_s27 = smov 0   ;;  %s5694_s0 = inlined_call_operand.vmem [shape: bf16[2,4,81,4], index: 0, kind: input, shape index: {}]   ;;  %s5695_s1 = inlined_call_operand.vmem [shape: f32[4,81,1], index: 1, kind: input, shape index: {}]   ;;  %s5696_s2 = inlined_call_operand.vmem [shape: bf16[2,81,4], index: 2, kind: input, shape index: {}]   ;;  %s5697_s3 = inlined_call_operand.vmem [shape: bf16[4,128], index: 3, kind: input, shape index: {}]   ;;  %s5698_s4 = inlined_call_operand.vmem [shape: bf16[9,128,128], index: 4, kind: input, shape index: {}]   ;;  %s5699_s5 = inlined_call_operand.vmem [shape: bf16[128,128], index: 5, kind: input, shape index: {}]   ;;  %s5700_s6 = inlined_call_operand.vmem [shape: bf16[4,128], index: 6, kind: input, shape index: {}]   ;;  %s5701_s7 = inlined_call_operand.vmem [shape: f32[8,128], index: 7, kind: input, shape index: {}]   ;;  %s5702_s8 = inlined_call_operand.vmem [shape: f32[2,81,128], index: 8, kind: output, shape index: {}]  }
   0x1 LB: > { %s3257_s28 = sadd.s32 4294967295, %s4343_s27   ;;  %p3261_p0 = scmp.ge.s32.totalorder %s4343_s27, 1  ;;  %s4343_s27 = sphi %s4393_s27, %s18_s27  }
   0x2   : > { %p272_p1 = scmp.lt.s32.totalorder %s4343_s27, 3 }
   0x4   : > { %p273_p2 = pnand %p3261_p0, %p272_p1 }
   0x5   : > { %p311_p3 = scmp.lt.s32.totalorder (!%p273_p2), %s3257_s28, 1 }
   0x6   : > { %276 = sbr.rel (%p273_p2) target bundleno = 851 (0x353), region = 52 }
   0xb   : > { %v335_v0 = vld [vmem:[%s5697_s3] sm:$0x3]  ;;  %vm394_vm0 = vcmask 1041408   ;;  %v3302_v2 = vld [vmem:[%s5695_s1 + $0x58] sm:$0xff]  ;;  %s5721_s28 = smov (!%p311_p3, %s3257_s28), 1  ;;  %v3304_v3 = vld [vmem:[%s5695_s1 + $0x68] sm:$0xff] }
   0xc   : > { %4206 = vmatprep.subr.msk.bf16.mxu1 %vm394_vm0, %v335_v0  ;;  %v4406_v1 = vsel %vm394_vm0, %v335_v0, 0  ;;  %4208 = vmatprep.subr.msk.bf16.mxu0 %vm394_vm0, %v335_v0  ;;  %v4345_v4 = vmov 0   ;;  %s4210_s13 = smul.u32 176, %s5721_s28  ;;  %v3303_v5 = vld [vmem:[%s5695_s1 + $0x60] sm:$0xff]  ;;  %vm375_vm1 = vcmask 31744   ;;  %v3305_v6 = vld [vmem:[%s5695_s1 + $0x70] sm:$0xff] }
   0xd   : > { %3769 = vmatpush3.bf16.msra.mxu1 %v4406_v1  ;;  %3797 = vmatpush3.bf16.msra.mxu0 %v4406_v1  ;;  %v3306_v8 = vld [vmem:[%s5695_s1 + $0x78] sm:$0xff]  ;;  %v3307_v10 = vld [vmem:[%s5695_s1 + $0x80] sm:$0xff]  ;;  %v3308_v14 = vld [vmem:[%s5695_s1 + $0x88] sm:$0xff]  ;;  %v4346_v42 = vmov 0.0   ;;  %vm4347_vm2 = vmmov 0   ;;  %vm2666_vm4 = vcmask 1042432  }
   0xe   : > { %4207 = vmatprep.subr.msk.bf16.mxu1 %vm394_vm0, %v335_v0  ;;  %4224 = vset.pattern.permute.xlu0 %v4345_v4  ;;  %s4427_s18 = scalar_lea.vmem %s5694_s0, %s4210_s13  ;;  %v3309_v15 = vld [vmem:[%s5695_s1 + $0x90] sm:$0xff]  ;;  %v3310_v19 = vld [vmem:[%s5695_s1 + $0x98] sm:$0xff]  ;;  %v3311_v22 = vld [vmem:[%s5695_s1 + $0xa0] sm:$0xff]  ;;  %vm2294_vm3 = vsmask.f32 3328  ;;  %s4211_s26 = smul.u32 44, %s5721_s28 }
   0xf   : > { %782 = vperm.xlu0 %4224, %v3302_v2   ;;  %4225 = vset.pattern.permute.xlu1 %v4345_v4  ;;  %v4226_v7 = vld [vmem:[%s4427_s18] sm:$0xff]   ;;  %v4227_v9 = vld [vmem:[%s4427_s18 + $0x8] sm:$0xff]   ;;  %v4228_v11 = vld [vmem:[%s4427_s18 + $0x58] sm:$0xff]   ;;  %vm1621_vm5 = vsmask.f32 7424  ;;  %s4212_s24 = smul.u32 88, %s5721_s28 }
  0x10   : > { %792 = vperm.xlu1 %4225, %v3304_v3   ;;  %3770 = vmatprep.mubr.msk.bf16.mxu1 %vm375_vm1, %v4226_v7  ;;  %v4229_v12 = vld [vmem:[%s4427_s18 + $0x60] sm:$0xff]   ;;  %v4230_v13 = vld [vmem:[%s4427_s18 + $0x10] sm:$0xff]   ;;  %v4232_v16 = vld [vmem:[%s4427_s18 + $0x68] sm:$0xff]   ;;  %s5514_s11 = scalar_lea.vmem %s5696_s2, %s4211_s26 }
  0x11   : > { %3771 = vmatmul.mubr.msk.bf16.vlgmr.msra.gmra.mxu1 %vm375_vm1, %v4227_v9  ;;  %3798 = vmatprep.mubr.msk.bf16.mxu0 %vm375_vm1, %v4228_v11  ;;  %v4231_v17 = vld [vmem:[%s4427_s18 + $0x18] sm:$0xff]   ;;  %v4234_v18 = vld [vmem:[%s4427_s18 + $0x20] sm:$0xff]   ;;  %v4233_v20 = vld [vmem:[%s4427_s18 + $0x70] sm:$0xff]   ;;  %s5649_s29 = scalar_lea.vmem %s5702_s8, %s4212_s24 }
  0x12   : > { %3783 = vmatpush3.bf16.msra.mxu1 %v4406_v1  ;;  %3799 = vmatmul.mubr.msk.bf16.vlgmr.msra.gmra.mxu0 %vm375_vm1, %v4229_v12  ;;  %v4236_v21 = vld [vmem:[%s4427_s18 + $0x78] sm:$0xff]   ;;  %v4235_v23 = vld [vmem:[%s4427_s18 + $0x28] ss:$0 sps:$4 sm:$0x11]   ;;  %v519_v24 = vld [vmem:[%s5695_s1] sm:$0xff] }
  0x13   : > { %787 = vperm.xlu0 %4224, %v3303_v5   ;;  %3774 = vmatprep.mubr.msk.bf16.mxu1 %vm375_vm1, %v4230_v13  ;;  %v520_v25 = vld [vmem:[%s5695_s1 + $0x8] sm:$0xff]  ;;  %v4237_v26 = vld [vmem:[%s4427_s18 + $0x80] ss:$0 sps:$4 sm:$0x11]   ;;  %v521_v28 = vld [vmem:[%s5695_s1 + $0x10] sm:$0xff] }
  0x14   : > { %797 = vperm.xlu1 %4225, %v3305_v6   ;;  %4209 = vmatprep.subr.msk.bf16.mxu1 %vm394_vm0, %v335_v0  ;;  %v4238_v27 = vld [vmem:[%s4427_s18 + $0x2c] sm:$0xff]   ;;  %v522_v29 = vld [vmem:[%s5695_s1 + $0x18] sm:$0xff]  ;;  %v523_v31 = vld [vmem:[%s5695_s1 + $0x20] sm:$0xff] }
  0x15   : > { %3802 = vmatprep.mubr.msk.bf16.mxu0 %vm375_vm1, %v4232_v16  ;;  %v4239_v30 = vld [vmem:[%s4427_s18 + $0x34] sm:$0xff]   ;;  %v524_v32 = vld [vmem:[%s5695_s1 + $0x28] sm:$0xff]  ;;  %v4240_v33 = vld [vmem:[%s4427_s18 + $0x3c] sm:$0xff]   ;;  %3824 = vmatprep.subr.bf16.mxu0 %v4346_v42 }
  0x16   : > { %v525_v34 = vld [vmem:[%s5695_s1 + $0x30] sm:$0xff]  ;;  %v526_v35 = vld [vmem:[%s5695_s1 + $0x38] sm:$0xff]  ;;  %v4241_v36 = vld [vmem:[%s4427_s18 + $0x44] sm:$0xff]  }
  0x17   : > { %802 = vperm.xlu0 %4224, %v3306_v8   ;;  %v527_v37 = vld [vmem:[%s5695_s1 + $0x40] sm:$0xff]  ;;  %v528_v38 = vld [vmem:[%s5695_s1 + $0x48] sm:$0xff]  ;;  %v3335_v40 = vld [vmem:[%s5695_s1 + $0xb0] sm:$0xff] }
  0x18   : > { %807 = vperm.xlu1 %4225, %v3307_v10   ;;  %v4242_v39 = vld [vmem:[%s4427_s18 + $0x4c] sm:$0xff]   ;;  %v3336_v41 = vld [vmem:[%s5695_s1 + $0xb8] sm:$0xff]  ;;  %v4243_v44 = vld [vmem:[%s4427_s18 + $0x54] ss:$0 sps:$4 sm:$0x11]  }
  0x19   : > { %3775 = vmatmul.mubr.msk.bf16.gmra.mxu1 %vm375_vm1, %v4231_v17  ;;  %v3368_v43 = vld [vmem:[%s5695_s1 + $0x108] sm:$0xff]  ;;  %v3369_v45 = vld [vmem:[%s5695_s1 + $0x110] sm:$0xff]  ;;  %v3337_v47 = vld [vmem:[%s5695_s1 + $0xc0] sm:$0xff] }
  0x1a   : > { %3778 = vmatprep.mubr.msk.bf16.mxu1 %vm375_vm1, %v4234_v18  ;;  %3803 = vmatmul.mubr.msk.bf16.gmra.mxu0 %vm375_vm1, %v4233_v20  ;;  %v4244_v46 = vld [vmem:[%s4427_s18 + $0x84] sm:$0xff]   ;;  %v3370_v49 = vld [vmem:[%s5695_s1 + $0x118] sm:$0xff]  ;;  %v4245_v50 = vld [vmem:[%s4427_s18 + $0x8c] sm:$0xff]  }
  0x1b   : > { %812 = vperm.xlu0 %4224, %v3308_v14   ;;  %3806 = vmatprep.mubr.msk.bf16.mxu0 %vm375_vm1, %v4236_v21  ;;  %v3338_v48 = vld [vmem:[%s5695_s1 + $0xc8] sm:$0xff]  ;;  %v3371_v51 = vld [vmem:[%s5695_s1 + $0x120] sm:$0xff]  ;;  %v4246_v52 = vld [vmem:[%s4427_s18 + $0x94] sm:$0xff]  }
  0x1c   : > { %817 = vperm.xlu1 %4225, %v3309_v15   ;;  %v3339_v53 = vld [vmem:[%s5695_s1 + $0xd0] sm:$0xff]  ;;  %v4250_v54 = vld [vmem:[%s5698_s4 + $0x38] sm:$0xff]   ;;  %v3372_v57 = vld [vmem:[%s5695_s1 + $0x128] sm:$0xff] }
  0x1d   : > { %v3340_v55 = vld [vmem:[%s5695_s1 + $0xd8] sm:$0xff]  ;;  %v4251_v56 = vld [vmem:[%s5698_s4 + $0x30] sm:$0xff]   ;;  %v4248_v60 = vld [vmem:[%s4427_s18 + $0xa4] sm:$0xff]  }
  0x1e   : > { %v4247_v58 = vld [vmem:[%s4427_s18 + $0x9c] sm:$0xff]   ;;  %v3373_v59 = vld [vmem:[%s5695_s1 + $0x130] sm:$0xff]  ;;  %v4252_v61 = vld [vmem:[%s5698_s4 + $0x28] sm:$0xff]  }
  0x1f   : > { %822 = vperm.xlu0 %4224, %v3310_v19   ;;  %v3341_v62 = vld [vmem:[%s5695_s1 + $0xe0] sm:$0xff]  ;;  %v3342_v63 = vld [vmem:[%s5695_s1 + $0xe8] sm:$0xff]  ;;  %v3343_v4 = vld [vmem:[%s5695_s1 + $0xf0] sm:$0xff] }
  0x20   : > { %827 = vperm.xlu1 %4225, %v3311_v22   ;;  %v4253_v0 = vld [vmem:[%s5698_s4 + $0x20] sm:$0xff]   ;;  %v4249_v2 = vld [vmem:[%s4427_s18 + $0xac] ss:$0 sps:$4 sm:$0x11]   ;;  %v3344_v5 = vld [vmem:[%s5695_s1 + $0xf8] sm:$0xff] }
  0x21   : > { %3779 = vmatmul.mubr.msk.bf16.gmra.mxu1 %vm375_vm1, %v4235_v23  ;;  %v3375_v3 = vld [vmem:[%s5695_s1 + $0x140] sm:$0xff]  ;;  %v4254_v6 = vld [vmem:[%s5698_s4 + $0x18] sm:$0xff]   ;;  %v3376_v7 = vld [vmem:[%s5695_s1 + $0x148] sm:$0xff] }
  0x22   : > { %3784 = vmatprep.mubr.msk.bf16.mxu1 %vm375_vm1, %v4238_v27  ;;  %3807 = vmatmul.mubr.msk.bf16.gmra.mxu0 %vm375_vm1, %v4237_v26  ;;  %v3377_v8 = vld [vmem:[%s5695_s1 + $0x150] sm:$0xff]  ;;  %v4256_v11 = vld [vmem:[%s5698_s4 + $0x78] sm:$0xff]   ;;  %v4257_v12 = vld [vmem:[%s5698_s4 + $0x8] sm:$0xff]  }
  0x23   : > { %532 = vperm.xlu0 %4224, %v519_v24   ;;  %v529_v9 = vld [vmem:[%s5695_s1 + $0x50] sm:$0x1]  ;;  %3825 = vmatpush3.bf16.msra.mxu0 %v4256_v11  ;;  %v4259_v14 = vld [vmem:[%s5698_s4] sm:$0xff]   ;;  %v4260_v15 = vld [vmem:[%s5698_s4 + $0x68] sm:$0xff]  }
  0x24   : > { %537 = vperm.xlu1 %4225, %v520_v25   ;;  %v4255_v10 = vld [vmem:[%s5698_s4 + $0x10] sm:$0xff]   ;;  %3826 = vmatprep.subr.bf16.mxu0 %v4346_v42  ;;  %v4261_v16 = vld [vmem:[%s5698_s4 + $0x60] sm:$0xff]   ;;  %v4262_v17 = vld [vmem:[%s5698_s4 + $0x58] sm:$0xff]  }
  0x25   : > { %v4258_v13 = vld [vmem:[%s5698_s4 + $0x70] sm:$0xff]   ;;  %3840 = vmatprep.mubr.msk.bf16.mxu0 %vm4347_vm2, %v4346_v42  ;;  %v4266_v19 = vld [vmem:[%s5698_s4 + $0x48] sm:$0xff]   ;;  %v4268_v20 = vld [vmem:[%s5698_s4 + $0x40] sm:$0xff]  }
  0x26   : > { %v4264_v18 = vld [vmem:[%s5698_s4 + $0x50] sm:$0xff]  }
  0x27   : > { %542 = vperm.xlu0 %4224, %v521_v28   ;;  %3827 = vmatpush3.bf16.msra.mxu0 %v4258_v13  ;;  %v4263_v13 = vld [vmem:[%s5698_s4 + $0xf8] sm:$0xff]  }
  0x28   : > { %547 = vperm.xlu1 %4225, %v522_v29   ;;  %3828 = vmatprep.subr.bf16.mxu0 %v4346_v42 }
  0x29   : > { %3785 = vmatmul.mubr.msk.bf16.vlgmr.msra.gmra.mxu1 %vm375_vm1, %v4239_v30 }
  0x2a   : > { %3788 = vmatprep.mubr.msk.bf16.mxu1 %vm375_vm1, %v4240_v33  ;;  %3811 = vmatpush3.bf16.msra.mxu1 %v4406_v1  ;;  %v3374_v1 = vld [vmem:[%s5695_s1 + $0x138] sm:$0xff] }
  0x2b   : > { %552 = vperm.xlu0 %4224, %v523_v31   ;;  %3860 = vmatprep.subr.bf16.mxu1 %v4346_v42 }
  0x2c   : > { %557 = vperm.xlu1 %4225, %v524_v32   ;;  %3829 = vmatpush3.bf16.msra.mxu0 %v4260_v15 }
  0x2d   : > { %3830 = vmatprep.subr.bf16.mxu0 %v4346_v42 }
  0x2f   : > { %562 = vperm.xlu0 %4224, %v525_v34  }
  0x30   : > { %567 = vperm.xlu1 %4225, %v526_v35   ;;  %3831 = vmatpush3.bf16.msra.mxu0 %v4261_v16 }
  0x31   : > { %3789 = vmatmul.mubr.msk.bf16.gmra.mxu1 %vm375_vm1, %v4241_v36  ;;  %3832 = vmatprep.subr.bf16.mxu0 %v4346_v42 }
  0x32   : > { %3792 = vmatprep.mubr.msk.bf16.mxu1 %vm375_vm1, %v4242_v39 }
  0x33   : > { %572 = vperm.xlu0 %4224, %v527_v37  }
  0x34   : > { %577 = vperm.xlu1 %4225, %v528_v38   ;;  %3833 = vmatpush3.bf16.msra.mxu0 %v4262_v17 }
  0x35   : > { %3834 = vmatprep.subr.bf16.mxu0 %v4346_v42 }
  0x37   : > { %1025 = vperm.xlu0 %4224, %v3335_v40  }
  0x38   : > { %1030 = vperm.xlu1 %4225, %v3336_v41   ;;  %3835 = vmatpush3.bf16.msra.mxu0 %v4264_v18 }
  0x39   : > { %3793 = vmatmul.mubr.msk.bf16.gmra.mxu1 %vm375_vm1, %v4243_v44  ;;  %3836 = vmatprep.subr.bf16.mxu0 %v4346_v42  ;;  %v4703_v44 = vld [vmem:[%s5701_s7] ss:$0 sm:$0xff] }
  0x3a   : > { %3812 = vmatprep.mubr.msk.bf16.mxu1 %vm375_vm1, %v4244_v46 }
  0x3b   : > { %1268 = vperm.xlu0 %4224, %v3368_v43  }
  0x3c   : > { %1273 = vperm.xlu1 %4225, %v3369_v45   ;;  %3837 = vmatpush3.bf16.msra.mxu0 %v4266_v19 }
  0x3d   : > { %3838 = vmatprep.subr.bf16.mxu0 %v4346_v42 }
  0x3f   : > { %1035 = vperm.xlu0 %4224, %v3337_v47  }
  0x40   : > { %1040 = vperm.xlu1 %4225, %v3338_v48   ;;  %3839 = vmatpush3.bf16.msra.mxu0 %v4268_v20 }
  0x41   : > { %3813 = vmatmul.mubr.msk.bf16.vlgmr.msra.gmra.mxu1 %vm375_vm1, %v4245_v50  ;;  %3896 = vmatprep.subr.bf16.mxu0 %v4346_v42 }
  0x42   : > { %3816 = vmatprep.mubr.msk.bf16.mxu1 %vm375_vm1, %v4246_v52  ;;  %3861 = vmatpush3.bf16.msra.mxu1 %v4250_v54  ;;  %v4713_v52 = vld [vmem:[%s5701_s7 + $0x1] ss:$0 sm:$0xff] }
  0x43   : > { %1278 = vperm.xlu0 %4224, %v3370_v49   ;;  %3862 = vmatprep.subr.bf16.mxu1 %v4346_v42 }
  0x44   : > { %1283 = vperm.xlu1 %4225, %v3371_v51  }
  0x46   : > { %3863 = vmatpush3.bf16.msra.mxu1 %v4251_v56 }
  0x47   : > { %1045 = vperm.xlu0 %4224, %v3339_v53   ;;  %3864 = vmatprep.subr.bf16.mxu1 %v4346_v42 }
  0x48   : > { %1050 = vperm.xlu1 %4225, %v3340_v55  }
  0x49   : > { %3817 = vmatmul.mubr.msk.bf16.gmra.mxu1 %vm375_vm1, %v4247_v58 }
  0x4a   : > { %3820 = vmatprep.mubr.msk.bf16.mxu1 %vm375_vm1, %v4248_v60  ;;  %3865 = vmatpush3.bf16.msra.mxu1 %v4252_v61 }
  0x4b   : > { %1288 = vperm.xlu0 %4224, %v3372_v57   ;;  %3866 = vmatprep.subr.bf16.mxu1 %v4346_v42 }
  0x4c   : > { %1293 = vperm.xlu1 %4225, %v3373_v59  }
  0x4e   : > { %3867 = vmatpush3.bf16.msra.mxu1 %v4253_v0 }
  0x4f   : > { %1055 = vperm.xlu0 %4224, %v3341_v62   ;;  %3868 = vmatprep.subr.bf16.mxu1 %v4346_v42 }
  0x50   : > { %1060 = vperm.xlu1 %4225, %v3342_v63  }
  0x51   : > { %3821 = vmatmul.mubr.msk.bf16.gmra.mxu1 %vm375_vm1, %v4249_v2 }
  0x52   : > { %3869 = vmatpush3.bf16.msra.mxu1 %v4254_v6  ;;  %3876 = vmatprep.mubr.msk.bf16.mxu1 %vm4347_vm2, %v4346_v42 }
  0x53   : > { %1298 = vperm.xlu0 %4224, %v3374_v1   ;;  %3870 = vmatprep.subr.bf16.mxu1 %v4346_v42 }
  0x54   : > { %1303 = vperm.xlu1 %4225, %v3375_v3  }
  0x56   : > { %3871 = vmatpush3.bf16.msra.mxu1 %v4255_v10 }
  0x57   : > { %1065 = vperm.xlu0 %4224, %v3343_v4   ;;  %3872 = vmatprep.subr.bf16.mxu1 %v4346_v42 }
  0x58   : > { %1070 = vperm.xlu1 %4225, %v3344_v5  }
  0x5a   : > { %3873 = vmatpush3.bf16.msra.mxu1 %v4257_v12 }
  0x5b   : > { %1308 = vperm.xlu0 %4224, %v3376_v7   ;;  %3874 = vmatprep.subr.bf16.mxu1 %v4346_v42 }
  0x5c   : > { %1313 = vperm.xlu1 %4225, %v3377_v8  }
  0x5e   : > { %3875 = vmatpush3.bf16.msra.mxu1 %v4259_v14 }
  0x5f   : > { %582 = vperm.xlu0 %4224, %v529_v9   ;;  %3932 = vmatprep.subr.bf16.mxu1 %v4346_v42 }
  0x8a   : > { %v4664_v21 = vpop.permute.xlu0 %782 }
  0x8b   : > { %v4676_v28 = vpop.permute.xlu1 %792 }
  0x8e   : > { %v4666_v22 = vpop.permute.xlu0 %787 }
  0x8f   : > { %v4680_v30 = vpop.permute.xlu1 %797 }
  0x92   : > { %v4668_v23 = vpop.permute.xlu0 %802 }
  0x93   : > { %v4684_v32 = vpop.permute.xlu1 %807 }
  0x96   : > { %v4670_v24 = vpop.permute.xlu0 %812 }
  0x97   : > { %v4688_v34 = vpop.permute.xlu1 %817 }
  0x9a   : > { %v4672_v25 = vpop.permute.xlu0 %822 }
  0x9b   : > { %v4692_v36 = vpop.permute.xlu1 %827 }
  0x9e   : > { %v533_v26 = vpop.permute.xlu0 %532 }
  0x9f   : > { %v538_v38 = vpop.permute.xlu1 %537 }
  0xa2   : > { %v4674_v27 = vpop.permute.xlu0 %542 }
  0xa3   : > { %v548_v40 = vpop.permute.xlu1 %547 }
  0xa6   : > { %v4678_v29 = vpop.permute.xlu0 %552 }
  0xa7   : > { %v4705_v47 = vpop.permute.xlu1 %557 }
  0xaa   : > { %v4682_v31 = vpop.permute.xlu0 %562 }
  0xab   : > { %v4718_v60 = vpop.permute.xlu1 %567 }
  0xae   : > { %v4686_v33 = vpop.permute.xlu0 %572 }
  0xaf   : > { %v4730_v12 = vpop.permute.xlu1 %577 }
  0xb2   : > { %v4690_v35 = vpop.permute.xlu0 %1025 }
  0xb6   : > { %v4694_v37 = vpop.permute.xlu0 %1268 }
  0xba   : > { %v4696_v39 = vpop.permute.xlu0 %1035 }
  0xbe   : > { %v4698_v41 = vpop.permute.xlu0 %1278 }
  0xc2   : > { %v4708_v51 = vpop.permute.xlu0 %1045 }
  0xc6   : > { %v4722_v2 = vpop.permute.xlu0 %1288 }
  0xca   : > { %v4743_v20 = vpop.permute.xlu0 %1055 }
  0xd1   : > { %v3772_v43 = vpop.f32.mrf.mxu1 }
  0xd2   : > { %v3800_v46 = vpop.f32.mrf.mxu0  ;;  %v484_v61 = vmul.f32 %v3772_v43, %v4703_v44 }
  0xd3   : > { %v432_v45 = vpop.f32.mrf.mxu1  ;;  %v984_v19 = vmul.f32 %v3800_v46, %v4703_v44 }
  0xd4   : > { %v482_v48 = vmul.f32 %v4703_v44, %v432_v45  ;;  %v937_v50 = vpop.f32.mrf.mxu0  ;;  %v499_v7 = vadd.f32 %v4713_v52, %v484_v61 }
  0xd5   : > { %v3773_v49 = vpop.f32.mrf.mxu1  ;;  %v982_v61 = vmul.f32 %v4703_v44, %v937_v50  ;;  %v4772_v50 = vpop.permute.xlu0 %1298 }
  0xd6   : > { %v497_v53 = vadd.f32 %v4713_v52, %v482_v48  ;;  %v3801_v55 = vpop.f32.mrf.mxu0  ;;  %v485_v56 = vmul.f32 %v3773_v49, %v4703_v44  ;;  %v4265_v48 = vld [vmem:[%s5698_s4 + $0xf0] sm:$0xff]  }
  0xd7   : > { %v435_v54 = vpop.f32.mrf.mxu1 }
  0xd8   : > { %v483_v57 = vmul.f32 %v4703_v44, %v435_v54  ;;  %v940_v59 = vpop.f32.mrf.mxu0  ;;  %v508_v62 = vmax.f32 %v497_v53, 0.0  ;;  %v500_v3 = vadd.f32 %v4713_v52, %v485_v56  ;;  %v4758_v56 = vpop.permute.xlu1 %1030 }
  0xd9   : > { %v3776_v58 = vpop.f32.mrf.mxu1 }
  0xda   : > { %v498_v63 = vadd.f32 %v4713_v52, %v483_v57  ;;  %v3804_v1 = vpop.f32.mrf.mxu0  ;;  %v585_v8 = vmul.f32 %v533_v26, %v508_v62  ;;  %v511_v14 = vmax.f32 %v500_v3, 0.0  ;;  %v510_v26 = vmax.f32 %v499_v7, 0.0 }
  0xdb   : > { %v448_v0 = vpop.f32.mrf.mxu1  ;;  %v994_v57 = vadd.f32 %v4713_v52, %v984_v19  ;;  %v983_v7 = vmul.f32 %v4703_v44, %v940_v59 }
  0xdc   : > { %v509_v4 = vmax.f32 %v498_v63, 0.0  ;;  %v4725_v6 = vpop.f32.mrf.mxu0  ;;  %v588_v49 = vmul.f32 %v548_v40, %v511_v14  ;;  %v587_v62 = vmul.f32 %v4674_v27, %v510_v26  ;;  %v985_v63 = vmul.f32 %v3801_v55, %v4703_v44  ;;  %v4780_v26 = vpop.permute.xlu1 %1273 }
  0xdd   : > { %v3777_v5 = vpop.f32.mrf.mxu1 }
  0xde   : > { %v586_v9 = vmul.f32 %v538_v38, %v509_v4  ;;  %v4728_v11 = vpop.f32.mrf.mxu0  ;;  %v486_v38 = vmul.f32 %v4703_v44, %v448_v0  ;;  %v488_v0 = vmul.f32 %v3776_v58, %v4703_v44  ;;  %v489_v27 = vmul.f32 %v3777_v5, %v4703_v44 }
  0xdf   : > { %v451_v10 = vpop.f32.mrf.mxu1  ;;  %v1004_v58 = vmax.f32 %v994_v57, 0.0  ;;  %v995_v59 = vadd.f32 %v4713_v52, %v985_v63  ;;  %v988_v5 = vmul.f32 %v3804_v1, %v4703_v44 }
  0xe0   : > { %v4735_v15 = vpack.c.bf16 %v586_v9, %v585_v8  ;;  %v487_v16 = vmul.f32 %v4703_v44, %v451_v10  ;;  %v4740_v18 = vpop.f32.mrf.mxu0  ;;  %v501_v40 = vadd.f32 %v4713_v52, %v486_v38  ;;  %v4267_v8 = vld [vmem:[%s5698_s4 + $0xe8] sm:$0xff]   ;;  %v4770_v9 = vpack.c.bf16 %v588_v49, %v587_v62 }
  0xe1   : > { %v4738_v17 = vpop.f32.mrf.mxu1  ;;  %v503_v14 = vadd.f32 %v4713_v52, %v488_v0  ;;  %v993_v38 = vadd.f32 %v4713_v52, %v983_v7  ;;  %v504_v49 = vadd.f32 %v4713_v52, %v489_v27  ;;  %v4794_v57 = vmul.f32 %v4696_v39, %v1004_v58  ;;  %v4271_v39 = vld [vmem:[%s5698_s4 + $0xd8] sm:$0xff]  }
  0xe2   : > { %3877 = vmatmul.mubr.bf16.vlgmr.msra.gmra.mxu1 %v4735_v15  ;;  %v3808_v45 = vpop.f32.mrf.mxu0  ;;  %v502_v46 = vadd.f32 %v4713_v52, %v487_v16  ;;  %v512_v16 = vmax.f32 %v501_v40, 0.0  ;;  %v1005_v62 = vmax.f32 %v995_v59, 0.0  ;;  %v4798_v40 = vpop.permute.xlu0 %1065 }
  0xe3   : > { %v4747_v43 = vpop.f32.mrf.mxu1  ;;  %3880 = vmatprep.mubr.msk.bf16.mxu1 %vm4347_vm2, %v4346_v42  ;;  %3933 = vmatpush3.bf16.msra.mxu1 %v4263_v13  ;;  %v992_v13 = vadd.f32 %v4713_v52, %v982_v61  ;;  %v514_v63 = vmax.f32 %v503_v14, 0.0  ;;  %v1003_v7 = vmax.f32 %v993_v38, 0.0  ;;  %v1041_v14 = vpop.permute.xlu1 %1040 }
  0xe4   : > { %v4755_v54 = vpop.f32.mrf.mxu0  ;;  %3934 = vmatprep.subr.bf16.mxu1 %v4346_v42  ;;  %v513_v55 = vmax.f32 %v502_v46, 0.0  ;;  %v589_v0 = vmul.f32 %v4678_v29, %v512_v16  ;;  %v986_v29 = vmul.f32 %v4703_v44, %v4725_v6  ;;  %v492_v16 = vmul.f32 %v4738_v17, %v4703_v44 }
  0xe5   : > { %v3781_v53 = vpop.f32.mrf.mxu1  ;;  %v1002_v61 = vmax.f32 %v992_v13, 0.0  ;;  %v591_v6 = vmul.f32 %v4682_v31, %v514_v63  ;;  %v987_v17 = vmul.f32 %v4703_v44, %v4740_v18  ;;  %v4273_v31 = vld [vmem:[%s5698_s4 + $0xd0] sm:$0xff]  }
  0xe6   : > { %v3809_v4 = vpop.f32.mrf.mxu0  ;;  %v590_v46 = vmul.f32 %v4705_v47, %v513_v55  ;;  %v515_v55 = vmax.f32 %v504_v49, 0.0 }
  0xe7   : > { %v467_v3 = vpop.f32.mrf.mxu1  ;;  %3935 = vmatpush3.bf16.msra.mxu1 %v4265_v48  ;;  %v4269_v48 = vld [vmem:[%s5698_s4 + $0xe0] sm:$0xff]  }
  0xe8   : > { %3936 = vmatprep.subr.bf16.mxu1 %v4346_v42  ;;  %v491_v58 = vmul.f32 %v4703_v44, %v467_v3  ;;  %v4811_v59 = vpack.c.bf16 %v590_v46, %v589_v0  ;;  %v490_v3 = vmul.f32 %v4703_v44, %v4747_v43  ;;  %v1074_v46 = vmul.f32 %v4758_v56, %v1003_v7 }
  0xe9   : > { %v3786_v10 = vpop.f32.mrf.mxu1  ;;  %v592_v43 = vmul.f32 %v4718_v60, %v515_v55  ;;  %v996_v56 = vadd.f32 %v4713_v52, %v986_v29  ;;  %v989_v60 = vmul.f32 %v4728_v11, %v4703_v44 }
  0xea   : > { %3881 = vmatmul.mubr.bf16.gmra.mxu1 %v4770_v9  ;;  %v506_v18 = vadd.f32 %v4713_v52, %v491_v58  ;;  %v505_v7 = vadd.f32 %v4713_v52, %v490_v3  ;;  %v990_v3 = vmul.f32 %v4703_v44, %v4755_v54  ;;  %v4272_v54 = vld [vmem:[%s5698_s4 + $0xb0] sm:$0xff]  }
  0xeb   : > { %v694_v19 = vpop.f32.mrf.mxu1  ;;  %3884 = vmatprep.mubr.msk.bf16.mxu1 %vm4347_vm2, %v4346_v42  ;;  %3937 = vmatpush3.bf16.msra.mxu1 %v4267_v8  ;;  %v4801_v8 = vadd.f32 %v4713_v52, %v988_v5  ;;  %v4860_v11 = vpack.c.bf16 %v592_v43, %v591_v6  ;;  %v4881_v43 = vadd.f32 %v4713_v52, %v989_v60 }
  0xec   : > { %v739_v45 = vmul.f32 %v4703_v44, %v694_v19  ;;  %3938 = vmatprep.subr.bf16.mxu1 %v4346_v42  ;;  %v741_v19 = vmul.f32 %v3786_v10, %v4703_v44  ;;  %v517_v58 = vmax.f32 %v506_v18, 0.0 }
  0xed   : > { %v3787_v53 = vpop.f32.mrf.mxu1 }
  0xee   : > { %v749_v1 = vadd.f32 %v4713_v52, %v739_v45  ;;  %v742_v47 = vmul.f32 %v3787_v53, %v4703_v44  ;;  %v1073_v45 = vmul.f32 %v4690_v35, %v1002_v61  ;;  %v1008_v35 = vmax.f32 %v4801_v8, 0.0 }
  0xef   : > { %v697_v4 = vpop.f32.mrf.mxu1  ;;  %3939 = vmatpush3.bf16.msra.mxu1 %v4269_v48  ;;  %v4819_v48 = vmul.f32 %v1041_v14, %v1005_v62  ;;  %v507_v62 = vadd.f32 %v4713_v52, %v492_v16  ;;  %v751_v63 = vadd.f32 %v4713_v52, %v741_v19 }
  0xf0   : > { %v740_v27 = vmul.f32 %v4703_v44, %v697_v4  ;;  %3940 = vmatprep.subr.bf16.mxu1 %v4346_v42  ;;  %v759_v38 = vmax.f32 %v749_v1, 0.0  ;;  %v752_v10 = vadd.f32 %v4713_v52, %v742_v47  ;;  %v4837_v1 = vpop.permute.xlu0 %1308  ;;  %v4853_v55 = vpack.c.bf16 %v1074_v46, %v1073_v45 }
  0xf1   : > { %v3790_v13 = vpop.f32.mrf.mxu1  ;;  %v1006_v45 = vmax.f32 %v996_v56, 0.0  ;;  %v518_v6 = vmax.f32 %v507_v62, 0.0  ;;  %v594_v62 = vmul.f32 %v4730_v12, %v517_v58 }
  0xf2   : > { %v750_v5 = vadd.f32 %v4713_v52, %v740_v27  ;;  %3885 = vmatmul.mubr.bf16.gmra.mxu1 %v4811_v59  ;;  %v830_v0 = vmul.f32 %v4664_v21, %v759_v38  ;;  %v4856_v21 = vadd.f32 %v4713_v52, %v987_v17  ;;  %v745_v14 = vmul.f32 %v3790_v13, %v4703_v44  ;;  %v4274_v38 = vld [vmem:[%s5698_s4 + $0xc8] sm:$0xff]  }
  0xf3   : > { %v710_v49 = vpop.f32.mrf.mxu1  ;;  %3888 = vmatprep.mubr.msk.bf16.mxu1 %vm4347_vm2, %v4346_v42  ;;  %3941 = vmatpush3.bf16.msra.mxu1 %v4271_v39  ;;  %v4270_v39 = vld [vmem:[%s5698_s4 + $0xb8] sm:$0xff]   ;;  %v516_v13 = vmax.f32 %v505_v7, 0.0  ;;  %v4897_v60 = vmul.f32 %v4708_v51, %v1006_v45  ;;  %v4900_v7 = vmul.f32 %v4743_v20, %v1008_v35  ;;  %v4275_v51 = vld [vmem:[%s5698_s4 + $0xa8] sm:$0xff]   ;;  %v972_v35 = vpop.f32.mrf.mxu0 }
  0xf4   : > { %v760_v53 = vmax.f32 %v750_v5, 0.0  ;;  %3942 = vmatprep.subr.bf16.mxu1 %v4346_v42  ;;  %v743_v8 = vmul.f32 %v4703_v44, %v710_v49  ;;  %v4868_v5 = vpop.permute.xlu1 %1283  ;;  %v761_v49 = vmax.f32 %v751_v63, 0.0  ;;  %v583_v46 = vpop.permute.xlu0 %582  ;;  %v755_v63 = vadd.f32 %v4713_v52, %v745_v14 }
  0xf5   : > { %v3791_v61 = vpop.f32.mrf.mxu1 }
  0xf6   : > { %v831_v4 = vmul.f32 %v4666_v22, %v760_v53  ;;  %v746_v47 = vmul.f32 %v3791_v61, %v4703_v44  ;;  %v762_v22 = vmax.f32 %v752_v10, 0.0  ;;  %v753_v17 = vadd.f32 %v4713_v52, %v743_v8 }
  0xf7   : > { %v713_v27 = vpop.f32.mrf.mxu1  ;;  %3943 = vmatpush3.bf16.msra.mxu1 %v4273_v31  ;;  %v1007_v61 = vmax.f32 %v4856_v21, 0.0  ;;  %v4902_v8 = vmul.f32 %v583_v46, %v518_v6  ;;  %v832_v12 = vmul.f32 %v4676_v28, %v761_v49 }
  0xf8   : > { %v4858_v29 = vpack.c.bf16 %v831_v4, %v830_v0  ;;  %v744_v16 = vmul.f32 %v4703_v44, %v713_v27  ;;  %3944 = vmatprep.subr.bf16.mxu1 %v4346_v42  ;;  %v756_v10 = vadd.f32 %v4713_v52, %v746_v47  ;;  %v833_v56 = vmul.f32 %v4680_v30, %v762_v22  ;;  %v4276_v30 = vld [vmem:[%s5698_s4 + $0xc0] sm:$0xff]   ;;  %v1051_v20 = vpop.permute.xlu1 %1050 }
  0xf9   : > { %v3794_v19 = vpop.f32.mrf.mxu1  ;;  %v593_v47 = vmul.f32 %v4686_v33, %v516_v13  ;;  %v4908_v27 = vadd.f32 %v4713_v52, %v990_v3  ;;  %v4918_v33 = vpack.c.bf16 %v4819_v48, %v4794_v57  ;;  %v4923_v3 = vmul.f32 %v1051_v20, %v1007_v61 }
  0xfa   : > { %3841 = vmatmul.mubr.bf16.vlgmr.msra.gmra.mxu0 %v4858_v29  ;;  %v754_v53 = vadd.f32 %v4713_v52, %v744_v16  ;;  %3889 = vmatmul.mubr.bf16.gmra.mxu1 %v4860_v11  ;;  %v766_v21 = vmax.f32 %v756_v10, 0.0  ;;  %v841_v14 = vpack.c.bf16 %v833_v56, %v832_v12  ;;  %v765_v16 = vmax.f32 %v755_v63, 0.0  ;;  %v4277_v10 = vld [vmem:[%s5698_s4 + $0xa0] sm:$0xff]  }
  0xfb   : > { %3897 = vmatpush3.bf16.msra.mxu0 %v4270_v39  ;;  %v726_v31 = vpop.f32.mrf.mxu1  ;;  %3844 = vmatprep.mubr.msk.bf16.mxu0 %vm4347_vm2, %v4346_v42  ;;  %v763_v39 = vmax.f32 %v753_v17, 0.0  ;;  %v4932_v57 = vmul.f32 %v4703_v44, %v972_v35  ;;  %v1630_v12 = vshll.u32 %v4770_v9, 16 }
  0xfc   : > { %v747_v18 = vmul.f32 %v4703_v44, %v726_v31  ;;  %3898 = vmatprep.subr.bf16.mxu0 %v4346_v42  ;;  %v764_v0 = vmax.f32 %v754_v53, 0.0  ;;  %3892 = vmatprep.mubr.msk.bf16.mxu1 %vm4347_vm2, %v4346_v42  ;;  %v5703_v53 = vshrl.u32 %v4770_v9, 16  ;;  %v2474_v56 = vshrl.u32 %v841_v14, 16 }
  0xfd   : > { %v3795_v4 = vpop.f32.mrf.mxu1  ;;  %3945 = vmatpush3.bf16.msra.mxu1 %v4274_v38  ;;  %v4920_v38 = vpack.c.bf16 %v594_v62, %v593_v47  ;;  %v834_v48 = vmul.f32 %v4668_v23, %v763_v39  ;;  %v1623_v23 = vshrl.u32 %v4735_v15, 16  ;;  %v2477_v61 = vshll.u32 %v841_v14, 16  ;;  %v4957_v47 = vpop.permute.xlu1 %1293  ;;  %v4278_v39 = vld [vmem:[%s5698_s4 + $0x98] sm:$0xff]  }
  0xfe   : > { %3946 = vmatprep.subr.bf16.mxu1 %v4346_v42  ;;  %v757_v58 = vadd.f32 %v4713_v52, %v747_v18  ;;  %v835_v45 = vmul.f32 %v4684_v32, %v764_v0  ;;  %v837_v32 = vmul.f32 %v4688_v34, %v766_v21  ;;  %v836_v34 = vmul.f32 %v4670_v24, %v765_v16 }
  0xff   : > { %v729_v22 = vpop.f32.mrf.mxu1  ;;  %3899 = vmatpush3.bf16.msra.mxu0 %v4272_v54  ;;  %v2476_v35 = vrot.slane %v2474_v56, 4  ;;  %v2479_v16 = vrot.slane %v2477_v61, 5  ;;  %v2466_v61 = vshrl.u32 %v4858_v29, 16 }
 0x100   : > { %v748_v28 = vmul.f32 %v4703_v44, %v729_v22  ;;  %3900 = vmatprep.subr.bf16.mxu0 %v4346_v42  ;;  %v767_v31 = vmax.f32 %v757_v58, 0.0  ;;  %v4951_v63 = vpack.c.bf16 %v835_v45, %v834_v48  ;;  %v4964_v21 = vpack.c.bf16 %v837_v32, %v836_v34  ;;  %v4279_v34 = vld [vmem:[%s5698_s4 + $0x90] sm:$0xff]  }
 0x101   : > { %v3814_v19 = vpop.f32.mrf.mxu1  ;;  %3947 = vmatpush3.bf16.msra.mxu1 %v4276_v30  ;;  %v1625_v30 = vshll.u32 %v4735_v15, 16 }
 0x102   : > { %v758_v13 = vadd.f32 %v4713_v52, %v748_v28  ;;  %v1227_v46 = vmul.f32 %v3814_v19, %v4703_v44  ;;  %3845 = vmatmul.mubr.bf16.gmra.mxu0 %v841_v14  ;;  %4004 = vmatprep.subr.bf16.mxu1 %v4346_v42  ;;  %v838_v20 = vmul.f32 %v4672_v25, %v767_v31  ;;  %v2483_v45 = vshrl.u32 %v4951_v63, 16 }
 0x103   : > { %3893 = vmatmul.mubr.bf16.gmra.mxu1 %v4920_v38  ;;  %v4937_v17 = vpop.f32.mrf.mxu1  ;;  %3901 = vmatpush3.bf16.msra.mxu0 %v4275_v51  ;;  %v2486_v31 = vshll.u32 %v4951_v63, 16  ;;  %v2492_v56 = vshrl.u32 %v4964_v21, 16 }
 0x104   : > { %v768_v54 = vmax.f32 %v758_v13, 0.0  ;;  %3902 = vmatprep.subr.bf16.mxu0 %v4346_v42  ;;  %3848 = vmatprep.mubr.msk.bf16.mxu0 %vm4347_vm2, %v4346_v42  ;;  %v1237_v18 = vadd.f32 %v4713_v52, %v1227_v46  ;;  %v4280_v13 = vld [vmem:[%s5698_s4 + $0x178] sm:$0xff]   ;;  %v4283_v46 = vld [vmem:[%s5698_s4 + $0x168] sm:$0xff]  }
 0x105   : > { %v3815_v62 = vpop.f32.mrf.mxu1  ;;  %3948 = vmatprep.mubr.msk.bf16.mxu1 %vm4347_vm2, %v4346_v42 }
 0x106   : > { %v1228_v0 = vmul.f32 %v3815_v62, %v4703_v44  ;;  %v839_v4 = vmul.f32 %v4692_v36, %v768_v54  ;;  %v4969_v36 = vrot.slane %v5703_v53, 4  ;;  %v1247_v14 = vmax.f32 %v1237_v18, 0.0 }
 0x107   : > { %v4959_v24 = vpop.f32.mrf.mxu1  ;;  %3903 = vmatpush3.bf16.msra.mxu0 %v4277_v10  ;;  %v5704_v10 = vshrl.u32 %v4920_v38, 16  ;;  %v2494_v18 = vrot.slane %v2492_v56, 4 }
 0x108   : > { %v1238_v58 = vadd.f32 %v4713_v52, %v1228_v0  ;;  %3904 = vmatprep.subr.bf16.mxu0 %v4346_v42  ;;  %v4983_v32 = vpack.c.bf16 %v839_v4, %v838_v20  ;;  %v2495_v4 = vshll.u32 %v4964_v21, 16  ;;  %v5007_v20 = vmul.f32 %v4698_v41, %v1247_v14 }
 0x109   : > { %v3818_v19 = vpop.f32.mrf.mxu1  ;;  %v5020_v14 = vrot.slane %v5704_v10, 4  ;;  %v2480_v10 = vor.u32 %v2479_v16, %v2476_v35  ;;  %v2296_v35 = vrot.slane %v1625_v30, 5 }
 0x10a   : > { %v1248_v48 = vmax.f32 %v1238_v58, 0.0  ;;  %v1231_v25 = vmul.f32 %v3818_v19, %v4703_v44  ;;  %3849 = vmatmul.mubr.bf16.gmra.mxu0 %v4951_v63  ;;  %v2468_v19 = vrot.slane %v2466_v61, 4  ;;  %v2501_v41 = vshrl.u32 %v4983_v32, 16  ;;  %v4282_v61 = vld [vmem:[%s5698_s4 + $0x88] sm:$0xff]  }
 0x10b   : > { %3949 = vmatmul.mubr.bf16.vlgmr.msra.gmra.mxu1 %v4853_v55  ;;  %v1196_v54 = vpop.f32.mrf.mxu1  ;;  %3905 = vmatpush3.bf16.msra.mxu0 %v4278_v39  ;;  %v5004_v39 = vpop.permute.xlu1 %1060 }
 0x10c   : > { %v4995_v62 = vmul.f32 %v4868_v5, %v1248_v48  ;;  %v1241_v0 = vadd.f32 %v4713_v52, %v1231_v25  ;;  %v1229_v63 = vmul.f32 %v4703_v44, %v1196_v54  ;;  %3852 = vmatprep.mubr.msk.bf16.mxu0 %vm4347_vm2, %v4346_v42  ;;  %3952 = vmatprep.mubr.msk.bf16.mxu1 %vm4347_vm2, %v4346_v42  ;;  %v4281_v5 = vld [vmem:[%s5698_s4 + $0x170] sm:$0xff]   ;;  %v2469_v48 = vshll.u32 %v4858_v29, 16 }
 0x10d   : > { %v3819_v58 = vpop.f32.mrf.mxu1  ;;  %3906 = vmatprep.subr.bf16.mxu0 %v4346_v42  ;;  %4005 = vmatpush3.bf16.msra.mxu1 %v4280_v13  ;;  %v2485_v25 = vrot.slane %v2483_v45, 4  ;;  %v2504_v29 = vshll.u32 %v4983_v32, 16  ;;  %v2497_v45 = vrot.slane %v2495_v4, 5  ;;  %v2299_v4 = vrot.slane %v1630_v12, 5 }
 0x10e   : > { %v1239_v54 = vadd.f32 %v4713_v52, %v1229_v63  ;;  %v1232_v53 = vmul.f32 %v3819_v58, %v4703_v44  ;;  %4006 = vmatprep.subr.bf16.mxu1 %v4346_v42  ;;  %v2471_v63 = vrot.slane %v2469_v48, 5  ;;  %v2488_v58 = vrot.slane %v2486_v31, 5 }
 0x10f   : > { %v1199_v13 = vpop.f32.mrf.mxu1  ;;  %3907 = vmatpush3.bf16.msra.mxu0 %v4279_v34  ;;  %v1251_v49 = vmax.f32 %v1241_v0, 0.0 }
 0x110   : > { %v1242_v6 = vadd.f32 %v4713_v52, %v1232_v53  ;;  %3908 = vmatprep.subr.bf16.mxu0 %v4346_v42  ;;  %v1230_v34 = vmul.f32 %v4703_v44, %v1199_v13  ;;  %v2472_v22 = vor.u32 %v2471_v63, %v2468_v19  ;;  %v2489_v51 = vor.u32 %v2488_v58, %v2485_v25 }
 0x111   : > { %v3822_v28 = vpop.f32.mrf.mxu1  ;;  %4007 = vmatpush3.bf16.msra.mxu1 %v4281_v5  ;;  %v1249_v48 = vmax.f32 %v1239_v54, 0.0  ;;  %v2295_v53 = vrot.slane %v1623_v23, 4  ;;  %v5056_v5 = vmul.f32 %v4772_v50, %v1251_v49  ;;  %v2498_v25 = vor.u32 %v2497_v45, %v2494_v18  ;;  %v4285_v50 = vld [vmem:[%s5698_s4 + $0x160] sm:$0xff]  }
 0x112   : > { %v1252_v31 = vmax.f32 %v1242_v6, 0.0  ;;  %3853 = vmatmul.mubr.bf16.gmra.mxu0 %v4964_v21  ;;  %4008 = vmatprep.subr.bf16.mxu1 %v4346_v42  ;;  %v1304_v28 = vpop.permute.xlu1 %1303  ;;  %v1240_v16 = vadd.f32 %v4713_v52, %v1230_v34  ;;  %v4284_v6 = vld [vmem:[%s5698_s4 + $0x80] sm:$0xff]   ;;  %v5048_v21 = vsel %vm2294_vm3, %v2472_v22, %v2480_v10  ;;  %v5051_v0 = vsel %vm2294_vm3, %v2480_v10, %v2489_v51 }
 0x113   : > { %3953 = vmatmul.mubr.bf16.gmra.mxu1 %v4918_v33  ;;  %v5042_v56 = vpop.f32.mrf.mxu1  ;;  %3909 = vmatpush3.bf16.msra.mxu0 %v4282_v61  ;;  %v2503_v22 = vrot.slane %v2501_v41, 4  ;;  %v2297_v49 = vor.u32 %v2296_v35, %v2295_v53  ;;  %v2300_v10 = vor.u32 %v2299_v4, %v4969_v36  ;;  %v2506_v61 = vrot.slane %v2504_v29, 5 }
 0x114   : > { %v5058_v19 = vmul.f32 %v1304_v28, %v1252_v31  ;;  %3856 = vmatprep.mubr.msk.bf16.mxu0 %vm4347_vm2, %v4346_v42  ;;  %3956 = vmatprep.mubr.msk.bf16.mxu1 %vm4347_vm2, %v4346_v42  ;;  %v1250_v54 = vmax.f32 %v1240_v16, 0.0  ;;  %v5070_v63 = vmul.f32 %v4722_v2, %v1249_v48  ;;  %v5705_v41 = vshrl.u32 %v4811_v59, 16  ;;  %v4287_v28 = vld [vmem:[%s5698_s4 + $0x158] sm:$0xff]  }
 0x115   : > { %v3823_v13 = vpop.f32.mrf.mxu1  ;;  %4009 = vmatpush3.bf16.msra.mxu1 %v4283_v46  ;;  %3910 = vmatprep.subr.bf16.mxu0 %v4346_v42  ;;  %v5076_v46 = vsel %vm2294_vm3, %v2489_v51, %v2498_v25  ;;  %v5084_v36 = vsel %vm2294_vm3, %v2297_v49, %v2300_v10  ;;  %v5086_v2 = vor.u32 %v2506_v61, %v2503_v22  ;;  %v5706_v29 = vshll.u32 %v4811_v59, 16 }
 0x116   : > { %4010 = vmatprep.subr.bf16.mxu1 %v4346_v42  ;;  %v1329_v18 = vpack.c.bf16 %v5058_v19, %v5056_v5  ;;  %v2302_v45 = vrot.slane %v5705_v41, 4  ;;  %v5081_v58 = vmul.f32 %v4957_v47, %v1250_v54  ;;  %v5092_v48 = vpack.c.bf16 %v4923_v3, %v4897_v60 }
 0x117   : > { %3911 = vmatpush3.bf16.msra.mxu0 %v4284_v6  ;;  %v2303_v34 = vrot.slane %v5706_v29, 5  ;;  %v1627_v51 = vrot.slane %v1625_v30, 1  ;;  %v5707_v47 = vshrl.u32 %v4860_v11, 16  ;;  %v5708_v53 = vshll.u32 %v4860_v11, 16 }
 0x118   : > { %3968 = vmatprep.subr.bf16.mxu0 %v4346_v42  ;;  %v1328_v60 = vpack.c.bf16 %v5081_v58, %v5070_v63  ;;  %v5108_v3 = vsel %vm2294_vm3, %v2498_v25, %v5086_v2  ;;  %v5709_v30 = vshll.u32 %v4920_v38, 16  ;;  %v5710_v4 = vmax.f32 %v4881_v43, 0.0 }
 0x119   : > { %v2306_v31 = vrot.slane %v5707_v47, 4  ;;  %v2307_v35 = vrot.slane %v5708_v53, 5  ;;  %4011 = vmatpush3.bf16.msra.mxu1 %v4285_v50  ;;  %v2304_v16 = vor.u32 %v2303_v34, %v2302_v45  ;;  %v5711_v54 = vpack.c.bf16 %v4902_v8, %v4902_v8  ;;  %v4289_v45 = vld [vmem:[%s5698_s4 + $0x150] sm:$0xff]  }
 0x11a   : > { %v2311_v6 = vrot.slane %v5709_v30, 5  ;;  %v1080_v22 = vmul.f32 %v5004_v39, %v5710_v4  ;;  %3857 = vmatmul.mubr.bf16.gmra.mxu0 %v4983_v32  ;;  %4012 = vmatprep.subr.bf16.mxu1 %v4346_v42  ;;  %v2667_v25 = vrot.slane %v4735_v15, 5  ;;  %v2668_v8 = vrot.slane %v4770_v9, 5  ;;  %v4290_v30 = vld [vmem:[%s5698_s4 + $0x148] sm:$0xff]  }
 0x11b   : > { %v2676_v13 = vrot.slane %v5711_v54, 5  ;;  %v2308_v50 = vor.u32 %v2307_v35, %v2306_v31  ;;  %3957 = vmatmul.mubr.bf16.gmra.mxu1 %v5092_v48  ;;  %3912 = vmatprep.mubr.msk.bf16.mxu0 %vm4347_vm2, %v4346_v42  ;;  %v5125_v43 = vsel %vm2294_vm3, %v2300_v10, %v2304_v16  ;;  %v2670_v32 = vrot.slane %v4811_v59, 5  ;;  %v4286_v31 = vld [vmem:[%s5698_s4 + $0x138] sm:$0xff]   ;;  %v4292_v54 = vld [vmem:[%s5698_s4 + $0x140] sm:$0xff]  }
 0x11c   : > { %v5128_v39 = vor.u32 %v2311_v6, %v5020_v14  ;;  %v1001_v49 = vadd.f32 %v4713_v52, %v4932_v57  ;;  %3960 = vmatprep.mubr.msk.bf16.mxu1 %vm4347_vm2, %v4346_v42  ;;  %v2672_v41 = vrot.slane %v4860_v11, 5  ;;  %v2674_v10 = vrot.slane %v4920_v38, 5  ;;  %v1071_v6 = vpop.permute.xlu1 %1070 }
 0x11d   : > { %v5137_v61 = vsel %vm2294_vm3, %v2304_v16, %v2308_v50  ;;  %v1628_v14 = vor.u32 %v1627_v51, %v1623_v23  ;;  %4013 = vmatpush3.bf16.msra.mxu1 %v4287_v28  ;;  %v5151_v29 = vsel %vm2666_vm4, %v2667_v25, %v2668_v8  ;;  %v5154_v34 = vsel %vm2666_vm4, %v2668_v8, %v2670_v32  ;;  %v4291_v25 = vld [vmem:[%s5698_s4 + $0x128] sm:$0xff]  }
 0x11e   : > { %v5148_v57 = vsel %vm2294_vm3, %v2308_v50, %v5128_v39  ;;  %4014 = vmatprep.subr.bf16.mxu1 %v4346_v42  ;;  %v5158_v15 = vsel %vm2666_vm4, %v2670_v32, %v2672_v41  ;;  %v5161_v23 = vsel %vm2666_vm4, %v2672_v41, %v2674_v10  ;;  %v5164_v51 = vsel %vm2666_vm4, %v2674_v10, %v2676_v13 }
 0x11f   : > { %v1632_v47 = vrot.slane %v1630_v12, 1  ;;  %v1010_v53 = vmax.f32 %v4908_v27, 0.0  ;;  %v5173_v35 = vpack.c.bf16 %v1080_v22, %v4900_v7  ;;  %v1011_v28 = vmax.f32 %v1001_v49, 0.0  ;;  %v4288_v7 = vld [vmem:[%s5698_s4 + $0x130] sm:$0xff]  }
 0x120   : > { %v5712_v4 = vshll.u32 %v4811_v59, 16  ;;  %v2107_v13 = vshll.u32 %v4853_v55, 16  ;;  %v5713_v50 = vshrl.u32 %v4770_v9, 16  ;;  %v2105_v49 = vshrl.u32 %v4853_v55, 16  ;;  %v4293_v9 = vld [vmem:[%s5698_s4 + $0x120] sm:$0xff]  }
 0x121   : > { %v1633_v16 = vsel %vm1621_vm5, %v1628_v14, %v1632_v47  ;;  %4015 = vmatpush3.bf16.msra.mxu1 %v4289_v45  ;;  %v1081_v27 = vmul.f32 %v4798_v40, %v1010_v53  ;;  %v1082_v12 = vmul.f32 %v1071_v6, %v1011_v28  ;;  %v2112_v10 = vshll.u32 %v4918_v33, 16  ;;  %v4294_v53 = vld [vmem:[%s5698_s4 + $0x118] sm:$0xff]  }
 0x122   : > { %3913 = vmatmul.mubr.bf16.vlgmr.msra.gmra.mxu0 %v1633_v16  ;;  %4016 = vmatprep.subr.bf16.mxu1 %v4346_v42  ;;  %v1640_v22 = vrot.slane %v5712_v4, 1  ;;  %v1636_v40 = vor.u32 %v5713_v50, %v1632_v47  ;;  %v2109_v41 = vrot.slane %v2107_v13, 1  ;;  %v5714_v55 = vshrl.u32 %v4811_v59, 16  ;;  %v4298_v50 = vld [vmem:[%s5698_s4 + $0x108] sm:$0xff]  }
 0x123   : > { %3961 = vmatmul.mubr.bf16.gmra.mxu1 %v5173_v35  ;;  %3969 = vmatpush3.bf16.msra.mxu0 %v4286_v31  ;;  %v5203_v8 = vpack.c.bf16 %v1082_v12, %v1081_v27  ;;  %v5715_v47 = vshll.u32 %v4860_v11, 16  ;;  %v2114_v28 = vrot.slane %v2112_v10, 1  ;;  %v2116_v6 = vshrl.u32 %v4918_v33, 16  ;;  %v4297_v33 = vld [vmem:[%s5698_s4 + $0x1f0] sm:$0xff]  }
 0x124   : > { %3970 = vmatprep.subr.bf16.mxu0 %v4346_v42  ;;  %3916 = vmatprep.mubr.msk.bf16.mxu0 %vm4347_vm2, %v4346_v42  ;;  %v1641_v32 = vsel %vm1621_vm5, %v1636_v40, %v1640_v22  ;;  %v1644_v14 = vor.u32 %v5714_v55, %v1640_v22  ;;  %v2110_v45 = vor.u32 %v2109_v41, %v2105_v49  ;;  %v2120_v27 = vshll.u32 %v5092_v48, 16  ;;  %v4299_v49 = vld [vmem:[%s5698_s4 + $0x1e8] sm:$0xff]  }
 0x125   : > { %3964 = vmatprep.mubr.msk.bf16.mxu1 %vm4347_vm2, %v4346_v42  ;;  %4017 = vmatpush3.bf16.msra.mxu1 %v4290_v30  ;;  %v1648_v31 = vrot.slane %v5715_v47, 1  ;;  %v4296_v30 = vld [vmem:[%s5698_s4 + $0x1f8] sm:$0xff]   ;;  %v5716_v12 = vshll.u32 %v4920_v38, 16  ;;  %v2118_v22 = vor.u32 %v2116_v6, %v2114_v28  ;;  %v1226_v40 = vmul.f32 %v4703_v44, %v4959_v24  ;;  %v4300_v24 = vld [vmem:[%s5698_s4 + $0x100] sm:$0xff]  }
 0x126   : > { %4018 = vmatprep.subr.bf16.mxu1 %v4346_v42  ;;  %v2115_v59 = vsel %vm1621_vm5, %v2110_v45, %v2114_v28  ;;  %v5718_v45 = vshrl.u32 %v4920_v38, 16  ;;  %v2132_v28 = vshrl.u32 %v5173_v35, 16 }
 0x127   : > { %3971 = vmatpush3.bf16.msra.mxu0 %v4288_v7  ;;  %v1649_v16 = vsel %vm1621_vm5, %v1644_v14, %v1648_v31  ;;  %v4295_v7 = vld [vmem:[%s5698_s4 + $0x110] sm:$0xff]   ;;  %v1656_v4 = vrot.slane %v5716_v12, 1  ;;  %v1236_v10 = vadd.f32 %v4713_v52, %v1226_v40  ;;  %v4306_v12 = vld [vmem:[%s5698_s4 + $0x1c8] sm:$0xff]   ;;  %v1215_v40 = vpop.f32.mrf.mxu1 }
 0x128   : > { %3972 = vmatprep.subr.bf16.mxu0 %v4346_v42 }
 0x129   : > { %4019 = vmatpush3.bf16.msra.mxu1 %v4292_v54  ;;  %v5717_v54 = vshrl.u32 %v4860_v11, 16  ;;  %v1225_v11 = vmul.f32 %v4703_v44, %v4937_v17  ;;  %v2128_v44 = vshll.u32 %v5173_v35, 16  ;;  %v4301_v17 = vld [vmem:[%s5698_s4 + $0x1e0] sm:$0xff]   ;;  %v1246_v14 = vmax.f32 %v1236_v10, 0.0  ;;  %v4305_v35 = vld [vmem:[%s5698_s4 + $0x1d0] sm:$0xff]  }
 0x12a   : > { %3917 = vmatmul.mubr.bf16.gmra.mxu0 %v1641_v32  ;;  %4076 = vmatprep.subr.bf16.mxu1 %v4346_v42  ;;  %v1660_v47 = vor.u32 %v5718_v45, %v1656_v4 }
 0x12b   : > { %3965 = vmatmul.mubr.bf16.gmra.mxu1 %v5203_v8  ;;  %3973 = vmatpush3.bf16.msra.mxu0 %v4291_v25  ;;  %v1652_v13 = vor.u32 %v5717_v54, %v1648_v31  ;;  %v2122_v25 = vrot.slane %v2120_v27, 1  ;;  %v2130_v31 = vrot.slane %v2128_v44, 1  ;;  %v1317_v38 = vmul.f32 %v4780_v26, %v1246_v14  ;;  %v4307_v54 = vld [vmem:[%s5698_s4 + $0x1a8] sm:$0xff]  }
 0x12c   : > { %3974 = vmatprep.subr.bf16.mxu0 %v4346_v42  ;;  %3920 = vmatprep.mubr.msk.bf16.mxu0 %vm4347_vm2, %v4346_v42 }
 0x12d   : > { %4020 = vmatprep.mubr.msk.bf16.mxu1 %vm4347_vm2, %v4346_v42  ;;  %v1657_v32 = vsel %vm1621_vm5, %v1652_v13, %v1656_v4  ;;  %v2123_v41 = vsel %vm1621_vm5, %v2118_v22, %v2122_v25  ;;  %v2134_v6 = vor.u32 %v2132_v28, %v2130_v31  ;;  %v4308_v22 = vld [vmem:[%s5698_s4 + $0x1c0] sm:$0xff]  }
 0x12f   : > { %3975 = vmatpush3.bf16.msra.mxu0 %v4293_v9  ;;  %v2124_v9 = vshrl.u32 %v5092_v48, 16  ;;  %v1235_v48 = vadd.f32 %v4713_v52, %v1225_v11  ;;  %v4336_v11 = vld [vmem:[%s5701_s7 + $0x1] ss:$0 sm:$0xff] }
 0x130   : > { %3976 = vmatprep.subr.bf16.mxu0 %v4346_v42 }
 0x131   : > { %v2126_v55 = vor.u32 %v2124_v9, %v2122_v25  ;;  %v4313_v9 = vld [vmem:[%s5698_s4 + $0x180] sm:$0xff]  }
 0x132   : > { %3921 = vmatmul.mubr.bf16.gmra.mxu0 %v1649_v16  ;;  %v1245_v16 = vmax.f32 %v1235_v48, 0.0 }
 0x133   : > { %4021 = vmatmul.mubr.bf16.vlgmr.msra.gmra.mxu1 %v2115_v59  ;;  %3977 = vmatpush3.bf16.msra.mxu0 %v4294_v53  ;;  %v4303_v53 = vld [vmem:[%s5698_s4 + $0x1d8] sm:$0xff]   ;;  %v2131_v52 = vsel %vm1621_vm5, %v2126_v55, %v2130_v31 }
 0x134   : > { %3924 = vmatprep.mubr.msk.bf16.mxu0 %vm4347_vm2, %v4346_v42  ;;  %4024 = vmatprep.mubr.msk.bf16.mxu1 %vm4347_vm2, %v4346_v42  ;;  %v1316_v59 = vmul.f32 %v4694_v37, %v1245_v16  ;;  %v4304_v37 = vld [vmem:[%s5698_s4 + $0x1b0] sm:$0xff]  }
 0x135   : > { %3978 = vmatprep.subr.bf16.mxu0 %v4346_v42  ;;  %4077 = vmatpush3.bf16.msra.mxu1 %v4296_v30  ;;  %v2136_v30 = vshll.u32 %v5203_v8, 16 }
 0x136   : > { %4078 = vmatprep.subr.bf16.mxu1 %v4346_v42  ;;  %v1326_v26 = vpack.c.bf16 %v1317_v38, %v1316_v59 }
 0x137   : > { %3979 = vmatpush3.bf16.msra.mxu0 %v4295_v7  ;;  %v4302_v7 = vld [vmem:[%s5698_s4 + $0x1b8] sm:$0xff]   ;;  %v2138_v27 = vrot.slane %v2136_v30, 1 }
 0x138   : > { %3980 = vmatprep.subr.bf16.mxu0 %v4346_v42 }
 0x139   : > { %4079 = vmatpush3.bf16.msra.mxu1 %v4297_v33  ;;  %v2139_v4 = vsel %vm1621_vm5, %v2134_v6, %v2138_v27  ;;  %v2140_v33 = vshrl.u32 %v5203_v8, 16  ;;  %v4309_v8 = vld [vmem:[%s5698_s4 + $0x1a0] sm:$0xff]  }
 0x13a   : > { %3925 = vmatmul.mubr.bf16.gmra.mxu0 %v1657_v32  ;;  %4080 = vmatprep.subr.bf16.mxu1 %v4346_v42 }
 0x13b   : > { %4025 = vmatmul.mubr.bf16.gmra.mxu1 %v2123_v41  ;;  %3981 = vmatpush3.bf16.msra.mxu0 %v4298_v50  ;;  %v2142_v13 = vor.u32 %v2140_v33, %v2138_v27  ;;  %v5719_v50 = vpack.c.bf16 %v4995_v62, %v5007_v20  ;;  %v4310_v62 = vld [vmem:[%s5698_s4 + $0x198] sm:$0xff]   ;;  %v4335_v20 = vld [vmem:[%s5701_s7] ss:$0 sm:$0xff] }
 0x13c   : > { %3928 = vmatprep.mubr.msk.bf16.mxu0 %vm4347_vm2, %v4346_v42  ;;  %4028 = vmatprep.mubr.msk.bf16.mxu1 %vm4347_vm2, %v4346_v42  ;;  %v1234_v25 = vmul.f32 %v4335_v20, %v1215_v40  ;;  %v1233_v32 = vmul.f32 %v4335_v20, %v5042_v56 }
 0x13d   : > { %4081 = vmatpush3.bf16.msra.mxu1 %v4299_v49  ;;  %3982 = vmatprep.subr.bf16.mxu0 %v4346_v42  ;;  %v4311_v49 = vld [vmem:[%s5698_s4 + $0x190] sm:$0xff]  }
 0x13e   : > { %4082 = vmatprep.subr.bf16.mxu1 %v4346_v42  ;;  %v1244_v41 = vadd.f32 %v4336_v11, %v1234_v25  ;;  %v1243_v56 = vadd.f32 %v4336_v11, %v1233_v32 }
 0x13f   : > { %3983 = vmatpush3.bf16.msra.mxu0 %v4300_v24 }
 0x140   : > { %4040 = vmatprep.subr.bf16.mxu0 %v4346_v42  ;;  %v1254_v63 = vmax.f32 %v1244_v41, 0.0  ;;  %v1253_v58 = vmax.f32 %v1243_v56, 0.0  ;;  %v4325_v56 = vld [vmem:[%s5699_s5 + $0x20] sm:$0xff]  }
 0x141   : > { %4083 = vmatpush3.bf16.msra.mxu1 %v4301_v17 }
 0x142   : > { %3929 = vmatmul.mubr.bf16.gmra.mxu0 %v1660_v47  ;;  %4084 = vmatprep.subr.bf16.mxu1 %v4346_v42  ;;  %v1324_v5 = vmul.f32 %v4837_v1, %v1253_v58  ;;  %v4315_v1 = vld [vmem:[%s5698_s4 + $0x230] sm:$0xff]  }
 0x143   : > { %4029 = vmatmul.mubr.bf16.gmra.mxu1 %v2131_v52  ;;  %3984 = vmatprep.mubr.msk.bf16.mxu0 %vm4347_vm2, %v4346_v42 }
 0x144   : > { %4032 = vmatprep.mubr.msk.bf16.mxu1 %vm4347_vm2, %v4346_v42 }
 0x145   : > { %4085 = vmatpush3.bf16.msra.mxu1 %v4303_v53 }
 0x146   : > { %4086 = vmatprep.subr.bf16.mxu1 %v4346_v42 }
 0x149   : > { %4087 = vmatpush3.bf16.msra.mxu1 %v4305_v35  ;;  %v4322_v35 = vld [vmem:[%s5699_s5 + $0x38] sm:$0xff]  }
 0x14a   : > { %3985 = vmatmul.mubr.bf16.vlgmr.msra.gmra.mxu0 %v1326_v26  ;;  %4088 = vmatprep.subr.bf16.mxu1 %v4346_v42 }
 0x14b   : > { %4033 = vmatmul.mubr.bf16.gmra.mxu1 %v2139_v4  ;;  %4041 = vmatpush3.bf16.msra.mxu0 %v4302_v7 }
 0x14c   : > { %4042 = vmatprep.subr.bf16.mxu0 %v4346_v42  ;;  %3988 = vmatprep.mubr.msk.bf16.mxu0 %vm4347_vm2, %v4346_v42 }
 0x14d   : > { %4036 = vmatprep.mubr.msk.bf16.mxu1 %vm4347_vm2, %v4346_v42  ;;  %4089 = vmatpush3.bf16.msra.mxu1 %v4306_v12 }
 0x14e   : > { %4090 = vmatprep.subr.bf16.mxu1 %v4346_v42 }
 0x14f   : > { %4043 = vmatpush3.bf16.msra.mxu0 %v4304_v37 }
 0x150   : > { %4044 = vmatprep.subr.bf16.mxu0 %v4346_v42 }
 0x151   : > { %4091 = vmatpush3.bf16.msra.mxu1 %v4308_v22  ;;  %v4323_v22 = vld [vmem:[%s5699_s5 + $0x30] sm:$0xff]  }
 0x152   : > { %3989 = vmatmul.mubr.bf16.gmra.mxu0 %v5719_v50  ;;  %4148 = vmatprep.subr.bf16.mxu1 %v4346_v42 }
 0x153   : > { %4037 = vmatmul.mubr.bf16.gmra.mxu1 %v2142_v13  ;;  %4045 = vmatpush3.bf16.msra.mxu0 %v4307_v54 }
 0x154   : > { %4046 = vmatprep.subr.bf16.mxu0 %v4346_v42  ;;  %3992 = vmatprep.mubr.msk.bf16.mxu0 %vm4347_vm2, %v4346_v42 }
 0x155   : > { %4092 = vmatprep.mubr.msk.bf16.mxu1 %vm4347_vm2, %v4346_v42 }
 0x157   : > { %4047 = vmatpush3.bf16.msra.mxu0 %v4309_v8 }
 0x158   : > { %4048 = vmatprep.subr.bf16.mxu0 %v4346_v42 }
 0x15a   : > { %3993 = vmatmul.mubr.bf16.gmra.mxu0 %v1328_v60  ;;  %v1314_v60 = vpop.permute.xlu1 %1313 }
 0x15b   : > { %4093 = vmatmul.mubr.bf16.vlgmr.msra.gmra.mxu1 %v5048_v21  ;;  %4049 = vmatpush3.bf16.msra.mxu0 %v4310_v62  ;;  %v4312_v21 = vld [vmem:[%s5698_s4 + $0x188] sm:$0xff]   ;;  %v1325_v24 = vmul.f32 %v1314_v60, %v1254_v63 }
 0x15c   : > { %3996 = vmatprep.mubr.msk.bf16.mxu0 %vm4347_vm2, %v4346_v42  ;;  %4096 = vmatprep.mubr.msk.bf16.mxu1 %vm4347_vm2, %v4346_v42  ;;  %v4324_v62 = vld [vmem:[%s5699_s5 + $0x28] sm:$0xff]  }
 0x15d   : > { %4050 = vmatprep.subr.bf16.mxu0 %v4346_v42  ;;  %v1330_v19 = vpack.c.bf16 %v1325_v24, %v1324_v5  ;;  %4149 = vmatpush3.bf16.msra.mxu1 %v4322_v35  ;;  %v4326_v24 = vld [vmem:[%s5699_s5 + $0x18] sm:$0xff]  }
 0x15e   : > { %4150 = vmatprep.subr.bf16.mxu1 %v4346_v42 }
 0x15f   : > { %4051 = vmatpush3.bf16.msra.mxu0 %v4311_v49 }
 0x160   : > { %4052 = vmatprep.subr.bf16.mxu0 %v4346_v42 }
 0x161   : > { %4151 = vmatpush3.bf16.msra.mxu1 %v4323_v22 }
 0x162   : > { %3997 = vmatmul.mubr.bf16.gmra.mxu0 %v1329_v18  ;;  %v4316_v18 = vld [vmem:[%s5698_s4 + $0x228] sm:$0xff]   ;;  %4152 = vmatprep.subr.bf16.mxu1 %v4346_v42 }
 0x163   : > { %4097 = vmatmul.mubr.bf16.gmra.mxu1 %v5051_v0  ;;  %4053 = vmatpush3.bf16.msra.mxu0 %v4312_v21  ;;  %v4314_v0 = vld [vmem:[%s5698_s4 + $0x238] sm:$0xff]  }
 0x164   : > { %4000 = vmatprep.mubr.msk.bf16.mxu0 %vm4347_vm2, %v4346_v42  ;;  %4100 = vmatprep.mubr.msk.bf16.mxu1 %vm4347_vm2, %v4346_v42 }
 0x165   : > { %4054 = vmatprep.subr.bf16.mxu0 %v4346_v42  ;;  %4153 = vmatpush3.bf16.msra.mxu1 %v4324_v62 }
 0x166   : > { %4154 = vmatprep.subr.bf16.mxu1 %v4346_v42 }
 0x167   : > { %4055 = vmatpush3.bf16.msra.mxu0 %v4313_v9 }
 0x168   : > { %4112 = vmatprep.subr.bf16.mxu0 %v4346_v42 }
 0x169   : > { %4155 = vmatpush3.bf16.msra.mxu1 %v4325_v56 }
 0x16a   : > { %4001 = vmatmul.mubr.bf16.gmra.mxu0 %v1330_v19  ;;  %4156 = vmatprep.subr.bf16.mxu1 %v4346_v42 }
 0x16b   : > { %4101 = vmatmul.mubr.bf16.gmra.mxu1 %v5076_v46  ;;  %4056 = vmatprep.mubr.msk.bf16.mxu0 %vm4347_vm2, %v4346_v42  ;;  %v4317_v46 = vld [vmem:[%s5698_s4 + $0x220] sm:$0xff]  }
 0x16c   : > { %4104 = vmatprep.mubr.msk.bf16.mxu1 %vm4347_vm2, %v4346_v42 }
 0x16d   : > { %4157 = vmatpush3.bf16.msra.mxu1 %v4326_v24 }
 0x16e   : > { %4158 = vmatprep.subr.bf16.mxu1 %v4346_v42 }
 0x172   : > { %4057 = vmatmul.mubr.bf16.vlgmr.msra.gmra.mxu0 %v5084_v36  ;;  %v4318_v36 = vld [vmem:[%s5698_s4 + $0x218] sm:$0xff]  }
 0x173   : > { %4105 = vmatmul.mubr.bf16.gmra.mxu1 %v5108_v3  ;;  %4113 = vmatpush3.bf16.msra.mxu0 %v4314_v0  ;;  %v4320_v3 = vld [vmem:[%s5698_s4 + $0x208] sm:$0xff]  }
 0x174   : > { %4114 = vmatprep.subr.bf16.mxu0 %v4346_v42  ;;  %4060 = vmatprep.mubr.msk.bf16.mxu0 %vm4347_vm2, %v4346_v42 }
 0x175   : > { %4108 = vmatprep.mubr.msk.bf16.mxu1 %vm4347_vm2, %v4346_v42 }
 0x177   : > { %4115 = vmatpush3.bf16.msra.mxu0 %v4315_v1 }
 0x178   : > { %4116 = vmatprep.subr.bf16.mxu0 %v4346_v42 }
 0x17a   : > { %4061 = vmatmul.mubr.bf16.gmra.mxu0 %v5125_v43  ;;  %v4321_v43 = vld [vmem:[%s5698_s4 + $0x200] sm:$0xff]  }
 0x17b   : > { %4109 = vmatmul.mubr.bf16.gmra.mxu1 %v5086_v2  ;;  %4117 = vmatpush3.bf16.msra.mxu0 %v4316_v18  ;;  %v4319_v2 = vld [vmem:[%s5698_s4 + $0x210] sm:$0xff]  }
 0x17c   : > { %4118 = vmatprep.subr.bf16.mxu0 %v4346_v42  ;;  %4064 = vmatprep.mubr.msk.bf16.mxu0 %vm4347_vm2, %v4346_v42 }
 0x17d   : > { %4164 = vmatprep.mubr.msk.bf16.mxu1 %vm4347_vm2, %v4346_v42 }
 0x17f   : > { %4119 = vmatpush3.bf16.msra.mxu0 %v4317_v46 }
 0x180   : > { %4120 = vmatprep.subr.bf16.mxu0 %v4346_v42 }
 0x182   : > { %4065 = vmatmul.mubr.bf16.gmra.mxu0 %v5137_v61 }
 0x183   : > { %4121 = vmatpush3.bf16.msra.mxu0 %v4318_v36  ;;  %4068 = vmatprep.mubr.msk.bf16.mxu0 %vm4347_vm2, %v4346_v42 }
 0x184   : > { %4122 = vmatprep.subr.bf16.mxu0 %v4346_v42 }
 0x187   : > { %4123 = vmatpush3.bf16.msra.mxu0 %v4319_v2 }
 0x188   : > { %4124 = vmatprep.subr.bf16.mxu0 %v4346_v42 }
 0x18a   : > { %4069 = vmatmul.mubr.bf16.gmra.mxu0 %v5148_v57 }
 0x18b   : > { %4125 = vmatpush3.bf16.msra.mxu0 %v4320_v3  ;;  %4072 = vmatprep.mubr.msk.bf16.mxu0 %vm4347_vm2, %v4346_v42 }
 0x18c   : > { %4126 = vmatprep.subr.bf16.mxu0 %v4346_v42 }
 0x18f   : > { %4127 = vmatpush3.bf16.msra.mxu0 %v4321_v43 }
 0x190   : > { %4184 = vmatprep.subr.bf16.mxu0 %v4346_v42 }
 0x192   : > { %4073 = vmatmul.mubr.bf16.gmra.mxu0 %v5128_v39 }
 0x193   : > { %4128 = vmatprep.mubr.msk.bf16.mxu0 %vm4347_vm2, %v4346_v42 }
 0x19a   : > { %4129 = vmatmul.mubr.bf16.vlgmr.msra.gmra.mxu0 %v5151_v29 }
 0x19b   : > { %4132 = vmatprep.mubr.msk.bf16.mxu0 %vm4347_vm2, %v4346_v42 }
 0x1a2   : > { %4133 = vmatmul.mubr.bf16.gmra.mxu0 %v5154_v34  ;;  %v1566_v61 = vpop.f32.mrf.mxu1 }
 0x1a3   : > { %4136 = vmatprep.mubr.msk.bf16.mxu0 %vm4347_vm2, %v4346_v42 }
 0x1a4   : > { %v3878_v57 = vpop.f32.mrf.mxu1 }
 0x1a6   : > { %v1569_v10 = vpop.f32.mrf.mxu1 }
 0x1a8   : > { %v3879_v44 = vpop.f32.mrf.mxu1 }
 0x1aa   : > { %4137 = vmatmul.mubr.bf16.gmra.mxu0 %v5158_v15  ;;  %v1574_v39 = vpop.f32.mrf.mxu1 }
 0x1ab   : > { %4140 = vmatprep.mubr.msk.bf16.mxu0 %vm4347_vm2, %v4346_v42 }
 0x1ac   : > { %v3882_v17 = vpop.f32.mrf.mxu1 }
 0x1ad   : > { %v4327_v17 = vld [vmem:[%s5699_s5 + $0x10] sm:$0xff]  }
 0x1ae   : > { %v1577_v29 = vpop.f32.mrf.mxu1  ;;  %4159 = vmatpush3.bf16.msra.mxu1 %v4327_v17 }
 0x1af   : > { %4160 = vmatprep.subr.bf16.mxu1 %v4346_v42 }
 0x1b0   : > { %v3883_v48 = vpop.f32.mrf.mxu1 }
 0x1b2   : > { %4141 = vmatmul.mubr.bf16.gmra.mxu0 %v5161_v23  ;;  %v1582_v55 = vpop.f32.mrf.mxu1 }
 0x1b3   : > { %4144 = vmatprep.mubr.msk.bf16.mxu0 %vm4347_vm2, %v4346_v42 }
 0x1b4   : > { %v3886_v34 = vpop.f32.mrf.mxu1 }
 0x1b6   : > { %v1585_v14 = vpop.f32.mrf.mxu1 }
 0x1b8   : > { %v3887_v45 = vpop.f32.mrf.mxu1 }
 0x1ba   : > { %v1446_v47 = vpop.f32.mrf.mxu0  ;;  %4145 = vmatmul.mubr.bf16.gmra.mxu0 %v5164_v51  ;;  %v1590_v31 = vpop.f32.mrf.mxu1  ;;  %v3023_v51 = vld [vmem:[%s5700_s6] sm:$0x3] }
 0x1bb   : > { %v5448_v15 = vadd.f32 %v1566_v61, %v1446_v47  ;;  %4186 = vmatprep.mubr.msk.bf16.mxu0 %vm4347_vm2, %v4346_v42  ;;  %v3063_v6 = vsel %vm394_vm0, %v3023_v51, 0 }
 0x1bc   : > { %v3842_v53 = vpop.f32.mrf.mxu0  ;;  %v3890_v28 = vpop.f32.mrf.mxu1  ;;  %4185 = vmatpush3.bf16.msra.mxu0 %v3063_v6 }
 0x1bd   : > { %v4328_v28 = vld [vmem:[%s5699_s5 + $0x8] sm:$0xff]  }
 0x1be   : > { %v1449_v16 = vpop.f32.mrf.mxu0  ;;  %v1593_v52 = vpop.f32.mrf.mxu1  ;;  %4161 = vmatpush3.bf16.msra.mxu1 %v4328_v28 }
 0x1bf   : > { %v5452_v23 = vadd.f32 %v1569_v10, %v1449_v16  ;;  %4162 = vmatprep.subr.bf16.mxu1 %v4346_v42 }
 0x1c0   : > { %v3843_v38 = vpop.f32.mrf.mxu0  ;;  %v3891_v30 = vpop.f32.mrf.mxu1 }
 0x1c2   : > { %v1454_v59 = vpop.f32.mrf.mxu0 }
 0x1c3   : > { %v5461_v7 = vadd.f32 %v1574_v39, %v1454_v59  ;;  %v1598_v26 = vpop.f32.mrf.mxu1  ;;  %v4329_v59 = vld [vmem:[%s5514_s11] sm:$0xff]  }
 0x1c4   : > { %v3846_v27 = vpop.f32.mrf.mxu0  ;;  %4187 = vmatmul.mubr.msk.bf16.vlgmr.msra.gmra.mxu0 %vm375_vm1, %v4329_v59 }
 0x1c5   : > { %v3894_v12 = vpop.f32.mrf.mxu1  ;;  %4190 = vmatprep.mubr.msk.bf16.mxu0 %vm4347_vm2, %v4346_v42 }
 0x1c6   : > { %v1457_v4 = vpop.f32.mrf.mxu0 }
 0x1c7   : > { %v5464_v37 = vadd.f32 %v1577_v29, %v1457_v4  ;;  %v1601_v33 = vpop.f32.mrf.mxu1 }
 0x1c8   : > { %v3847_v54 = vpop.f32.mrf.mxu0 }
 0x1c9   : > { %v3895_v13 = vpop.f32.mrf.mxu1 }
 0x1ca   : > { %v1462_v50 = vpop.f32.mrf.mxu0  ;;  %v4331_v13 = vld [vmem:[%s5514_s11 + $0x8] sm:$0xff]  }
 0x1cb   : > { %v5470_v8 = vadd.f32 %v1582_v55, %v1462_v50  ;;  %v1894_v40 = vpop.f32.mrf.mxu1 }
 0x1cc   : > { %v3850_v20 = vpop.f32.mrf.mxu0  ;;  %4191 = vmatmul.mubr.msk.bf16.gmra.mxu0 %vm375_vm1, %v4331_v13 }
 0x1cd   : > { %v3950_v25 = vpop.f32.mrf.mxu1  ;;  %4194 = vmatprep.mubr.msk.bf16.mxu0 %vm4347_vm2, %v4346_v42 }
 0x1ce   : > { %v1465_v32 = vpop.f32.mrf.mxu0 }
 0x1cf   : > { %v5476_v49 = vadd.f32 %v1585_v14, %v1465_v32  ;;  %v1897_v11 = vpop.f32.mrf.mxu1 }
 0x1d0   : > { %v3851_v41 = vpop.f32.mrf.mxu0 }
 0x1d1   : > { %v3951_v21 = vpop.f32.mrf.mxu1 }
 0x1d2   : > { %v1470_v63 = vpop.f32.mrf.mxu0 }
 0x1d3   : > { %v5481_v58 = vadd.f32 %v1590_v31, %v1470_v63  ;;  %v1902_v60 = vpop.f32.mrf.mxu1 }
 0x1d4   : > { %v3854_v9 = vpop.f32.mrf.mxu0 }
 0x1d5   : > { %v3954_v5 = vpop.f32.mrf.mxu1 }
 0x1d6   : > { %v1473_v19 = vpop.f32.mrf.mxu0 }
 0x1d7   : > { %v5487_v0 = vadd.f32 %v1593_v52, %v1473_v19  ;;  %v1905_v1 = vpop.f32.mrf.mxu1 }
 0x1d8   : > { %v3855_v18 = vpop.f32.mrf.mxu0 }
 0x1d9   : > { %v3955_v46 = vpop.f32.mrf.mxu1 }
 0x1da   : > { %v1478_v36 = vpop.f32.mrf.mxu0 }
 0x1db   : > { %v5490_v2 = vadd.f32 %v1598_v26, %v1478_v36  ;;  %v1910_v3 = vpop.f32.mrf.mxu1 }
 0x1dc   : > { %v3858_v43 = vpop.f32.mrf.mxu0 }
 0x1dd   : > { %v3958_v61 = vpop.f32.mrf.mxu1 }
 0x1de   : > { %v1481_v57 = vpop.f32.mrf.mxu0 }
 0x1df   : > { %v1913_v10 = vpop.f32.mrf.mxu1  ;;  %v4333_v57 = vld [vmem:[%s5514_s11 + $0x18] sm:$0xff]  }
 0x1e0   : > { %v3859_v44 = vpop.f32.mrf.mxu0 }
 0x1e1   : > { %v3959_v39 = vpop.f32.mrf.mxu1 }
 0x1e2   : > { %v1748_v29 = vpop.f32.mrf.mxu0 }
 0x1e3   : > { %v1786_v48 = vadd.f32 %v1748_v29, %v5448_v15  ;;  %v1918_v55 = vpop.f32.mrf.mxu1  ;;  %v4330_v15 = vld [vmem:[%s5699_s5] sm:$0xff]  }
 0x1e4   : > { %v3914_v34 = vpop.f32.mrf.mxu0  ;;  %4163 = vmatpush3.bf16.msra.mxu1 %v4330_v15 }
 0x1e5   : > { %v3962_v14 = vpop.f32.mrf.mxu1  ;;  %v5497_v45 = vadd.f32 %v1894_v40, %v1786_v48  ;;  %v4334_v34 = vld [vmem:[%s5514_s11 + $0x20] ss:$0 sps:$4 sm:$0xff]  }
 0x1e6   : > { %v1751_v47 = vpop.f32.mrf.mxu0 }
 0x1e7   : > { %v1787_v31 = vadd.f32 %v1751_v47, %v5452_v23  ;;  %v1921_v53 = vpop.f32.mrf.mxu1 }
 0x1e8   : > { %v3915_v16 = vpop.f32.mrf.mxu0 }
 0x1e9   : > { %v3963_v52 = vpop.f32.mrf.mxu1  ;;  %v5503_v38 = vadd.f32 %v1897_v11, %v1787_v31 }
 0x1ea   : > { %v1756_v30 = vpop.f32.mrf.mxu0 }
 0x1eb   : > { %v1788_v23 = vadd.f32 %v1756_v30, %v5461_v7  ;;  %v1926_v35 = vpop.f32.mrf.mxu1 }
 0x1ec   : > { %v3918_v51 = vpop.f32.mrf.mxu0 }
 0x1ed   : > { %v3966_v6 = vpop.f32.mrf.mxu1  ;;  %v5517_v26 = vadd.f32 %v1902_v60, %v1788_v23  ;;  %v4332_v60 = vld [vmem:[%s5514_s11 + $0x10] sm:$0xff]  }
 0x1ee   : > { %v1759_v27 = vpop.f32.mrf.mxu0  ;;  %4195 = vmatmul.mubr.msk.bf16.gmra.mxu0 %vm375_vm1, %v4332_v60 }
 0x1ef   : > { %v1789_v12 = vadd.f32 %v1759_v27, %v5464_v37  ;;  %v1929_v7 = vpop.f32.mrf.mxu1  ;;  %4198 = vmatprep.mubr.msk.bf16.mxu0 %vm4347_vm2, %v4346_v42 }
 0x1f0   : > { %v3919_v4 = vpop.f32.mrf.mxu0 }
 0x1f1   : > { %v3967_v33 = vpop.f32.mrf.mxu1  ;;  %v5523_v22 = vadd.f32 %v1905_v1, %v1789_v12 }
 0x1f2   : > { %v1764_v54 = vpop.f32.mrf.mxu0 }
 0x1f3   : > { %v1790_v50 = vadd.f32 %v1764_v54, %v5470_v8  ;;  %v2230_v40 = vpop.f32.mrf.mxu1 }
 0x1f4   : > { %v3922_v62 = vpop.f32.mrf.mxu0 }
 0x1f5   : > { %v4022_v20 = vpop.f32.mrf.mxu1  ;;  %v5527_v25 = vadd.f32 %v1910_v3, %v1790_v50 }
 0x1f6   : > { %v1767_v32 = vpop.f32.mrf.mxu0  ;;  %4199 = vmatmul.mubr.msk.bf16.gmra.mxu0 %vm375_vm1, %v4333_v57 }
 0x1f7   : > { %v1791_v37 = vadd.f32 %v1767_v32, %v5476_v49  ;;  %v2233_v11 = vpop.f32.mrf.mxu1  ;;  %4202 = vmatprep.mubr.msk.bf16.mxu0 %vm4347_vm2, %v4346_v42 }
 0x1f8   : > { %v3923_v41 = vpop.f32.mrf.mxu0 }
 0x1f9   : > { %v4023_v56 = vpop.f32.mrf.mxu1  ;;  %v1937_v21 = vadd.f32 %v1913_v10, %v1791_v37 }
 0x1fa   : > { %v1772_v63 = vpop.f32.mrf.mxu0 }
 0x1fb   : > { %v1792_v8 = vadd.f32 %v1772_v63, %v5481_v58  ;;  %v2238_v9 = vpop.f32.mrf.mxu1 }
 0x1fc   : > { %v3926_v24 = vpop.f32.mrf.mxu0 }
 0x1fd   : > { %v4026_v5 = vpop.f32.mrf.mxu1  ;;  %v1938_v19 = vadd.f32 %v1918_v55, %v1792_v8 }
 0x1fe   : > { %v1775_v1 = vpop.f32.mrf.mxu0  ;;  %4203 = vmatmul.mubr.msk.bf16.gmra.mxu0 %vm375_vm1, %v4334_v34 }
 0x1ff   : > { %v1793_v49 = vadd.f32 %v1775_v1, %v5487_v0  ;;  %v2241_v18 = vpop.f32.mrf.mxu1 }
 0x200   : > { %v3927_v46 = vpop.f32.mrf.mxu0 }
 0x201   : > { %v4027_v36 = vpop.f32.mrf.mxu1  ;;  %v1939_v3 = vadd.f32 %v1921_v53, %v1793_v49 }
 0x202   : > { %v1780_v43 = vpop.f32.mrf.mxu0 }
 0x203   : > { %v1794_v58 = vadd.f32 %v1780_v43, %v5490_v2  ;;  %v2246_v61 = vpop.f32.mrf.mxu1 }
 0x204   : > { %v3930_v10 = vpop.f32.mrf.mxu0 }
 0x205   : > { %v4030_v44 = vpop.f32.mrf.mxu1  ;;  %v1940_v39 = vadd.f32 %v1926_v35, %v1794_v58 }
 0x206   : > { %v1783_v17 = vpop.f32.mrf.mxu0 }
 0x207   : > { %v2249_v0 = vpop.f32.mrf.mxu1 }
 0x208   : > { %v3931_v29 = vpop.f32.mrf.mxu0 }
 0x209   : > { %v4031_v48 = vpop.f32.mrf.mxu1 }
 0x20a   : > { %v2040_v55 = vpop.f32.mrf.mxu0 }
 0x20b   : > { %v2078_v14 = vadd.f32 %v2040_v55, %v5497_v45  ;;  %v2254_v47 = vpop.f32.mrf.mxu1 }
 0x20c   : > { %v3986_v2 = vpop.f32.mrf.mxu0 }
 0x20d   : > { %v4034_v31 = vpop.f32.mrf.mxu1  ;;  %v2268_v53 = vadd.f32 %v2230_v40, %v2078_v14 }
 0x20e   : > { %v2043_v28 = vpop.f32.mrf.mxu0 }
 0x20f   : > { %v2079_v16 = vadd.f32 %v2043_v28, %v5503_v38  ;;  %v2257_v52 = vpop.f32.mrf.mxu1 }
 0x210   : > { %v3987_v15 = vpop.f32.mrf.mxu0 }
 0x211   : > { %v4035_v30 = vpop.f32.mrf.mxu1  ;;  %v5548_v23 = vadd.f32 %v2233_v11, %v2079_v16 }
 0x212   : > { %v2048_v35 = vpop.f32.mrf.mxu0 }
 0x213   : > { %v2080_v51 = vadd.f32 %v2048_v35, %v5517_v26  ;;  %v2262_v59 = vpop.f32.mrf.mxu1 }
 0x214   : > { %v3990_v6 = vpop.f32.mrf.mxu0 }
 0x215   : > { %v4038_v45 = vpop.f32.mrf.mxu1  ;;  %v2270_v27 = vadd.f32 %v2238_v9, %v2080_v51 }
 0x216   : > { %v2051_v12 = vpop.f32.mrf.mxu0 }
 0x217   : > { %v2081_v7 = vadd.f32 %v2051_v12, %v5523_v22  ;;  %v2265_v4 = vpop.f32.mrf.mxu1 }
 0x218   : > { %v3991_v33 = vpop.f32.mrf.mxu0 }
 0x219   : > { %v4039_v54 = vpop.f32.mrf.mxu1  ;;  %v5552_v13 = vadd.f32 %v2241_v18, %v2081_v7 }
 0x21a   : > { %v2056_v38 = vpop.f32.mrf.mxu0 }
 0x21b   : > { %v2082_v50 = vadd.f32 %v2056_v38, %v5527_v25  ;;  %v2596_v40 = vpop.f32.mrf.mxu1 }
 0x21c   : > { %v3994_v62 = vpop.f32.mrf.mxu0 }
 0x21d   : > { %v4094_v20 = vpop.f32.mrf.mxu1  ;;  %v2272_v32 = vadd.f32 %v2246_v61, %v2082_v50 }
 0x21e   : > { %v2059_v26 = vpop.f32.mrf.mxu0 }
 0x21f   : > { %v2083_v37 = vadd.f32 %v2059_v26, %v1937_v21  ;;  %v5555_v11 = vpop.f32.mrf.mxu1 }
 0x220   : > { %v3995_v41 = vpop.f32.mrf.mxu0 }
 0x221   : > { %v4095_v56 = vpop.f32.mrf.mxu1  ;;  %v5557_v63 = vadd.f32 %v2249_v0, %v2083_v37 }
 0x222   : > { %v2064_v22 = vpop.f32.mrf.mxu0 }
 0x223   : > { %v2084_v60 = vadd.f32 %v2064_v22, %v1938_v19  ;;  %v2604_v8 = vpop.f32.mrf.mxu1 }
 0x224   : > { %v3998_v9 = vpop.f32.mrf.mxu0 }
 0x225   : > { %v4098_v24 = vpop.f32.mrf.mxu1  ;;  %v2274_v5 = vadd.f32 %v2254_v47, %v2084_v60 }
 0x226   : > { %v2067_v1 = vpop.f32.mrf.mxu0 }
 0x227   : > { %v2085_v25 = vadd.f32 %v2067_v1, %v1939_v3  ;;  %v5559_v49 = vpop.f32.mrf.mxu1 }
 0x228   : > { %v3999_v18 = vpop.f32.mrf.mxu0 }
 0x229   : > { %v4099_v46 = vpop.f32.mrf.mxu1  ;;  %v5561_v36 = vadd.f32 %v2257_v52, %v2085_v25  ;;  %v5580_v18 = vld [vmem:[%s5701_s7 + $0x3] ss:$0 sm:$0xff] }
 0x22a   : > { %v2072_v21 = vpop.f32.mrf.mxu0 }
 0x22b   : > { %v2086_v43 = vadd.f32 %v2072_v21, %v1940_v39  ;;  %v2612_v58 = vpop.f32.mrf.mxu1 }
 0x22c   : > { %v4002_v61 = vpop.f32.mrf.mxu0 }
 0x22d   : > { %v4102_v57 = vpop.f32.mrf.mxu1  ;;  %v2276_v10 = vadd.f32 %v2262_v59, %v2086_v43 }
 0x22e   : > { %v2075_v44 = vpop.f32.mrf.mxu0 }
 0x22f   : > { %v5563_v19 = vpop.f32.mrf.mxu1 }
 0x230   : > { %v4003_v17 = vpop.f32.mrf.mxu0 }
 0x231   : > { %v4103_v0 = vpop.f32.mrf.mxu1 }
 0x232   : > { %v2401_v29 = vpop.f32.mrf.mxu0 }
 0x233   : > { %v2439_v48 = vadd.f32 %v2401_v29, %v2268_v53  ;;  %v2620_v3 = vpop.f32.mrf.mxu1 }
 0x234   : > { %v4058_v55 = vpop.f32.mrf.mxu0 }
 0x235   : > { %v4106_v34 = vpop.f32.mrf.mxu1  ;;  %v2634_v14 = vadd.f32 %v2596_v40, %v2439_v48 }
 0x236   : > { %v2404_v47 = vpop.f32.mrf.mxu0 }
 0x237   : > { %v5565_v2 = vpop.f32.mrf.mxu1 }
 0x238   : > { %v4059_v31 = vpop.f32.mrf.mxu0 }
 0x239   : > { %v4107_v39 = vpop.f32.mrf.mxu1 }
 0x23a   : > { %v2409_v28 = vpop.f32.mrf.mxu0 }
 0x23b   : > { %v2441_v16 = vadd.f32 %v2409_v28, %v2270_v27  ;;  %v2628_v52 = vpop.f32.mrf.mxu1 }
 0x23c   : > { %v4062_v15 = vpop.f32.mrf.mxu0 }
 0x23d   : > { %v4110_v30 = vpop.f32.mrf.mxu1  ;;  %v2636_v35 = vadd.f32 %v2604_v8, %v2441_v16  ;;  %v2440_v8 = vadd.f32 %v2404_v47, %v5548_v23 }
 0x23e   : > { %v2412_v51 = vpop.f32.mrf.mxu0 }
 0x23f   : > { %v2631_v59 = vpop.f32.mrf.mxu1  ;;  %v2635_v25 = vadd.f32 %v5555_v11, %v2440_v8  ;;  %v2442_v43 = vadd.f32 %v2412_v51, %v5552_v13 }
 0x240   : > { %v4063_v6 = vpop.f32.mrf.mxu0 }
 0x241   : > { %v4111_v45 = vpop.f32.mrf.mxu1  ;;  %v2637_v48 = vadd.f32 %v5559_v49, %v2442_v43 }
 0x242   : > { %v2417_v53 = vpop.f32.mrf.mxu0 }
 0x243   : > { %v2443_v12 = vadd.f32 %v2417_v53, %v2272_v32  ;;  %v5573_v32 = vld [vmem:[%s5701_s7 + $0x2] ss:$0 sm:$0xff] }
 0x244   : > { %v4066_v7 = vpop.f32.mrf.mxu0 }
 0x245   : > { %v2638_v4 = vadd.f32 %v2612_v58, %v2443_v12 }
 0x246   : > { %v2420_v33 = vpop.f32.mrf.mxu0 }
 0x247   : > { %v2444_v13 = vadd.f32 %v2420_v33, %v5557_v63 }
 0x248   : > { %v4067_v54 = vpop.f32.mrf.mxu0 }
 0x24a   : > { %v2425_v38 = vpop.f32.mrf.mxu0 }
 0x24b   : > { %v2445_v50 = vadd.f32 %v2425_v38, %v2274_v5 }
 0x24c   : > { %v4070_v40 = vpop.f32.mrf.mxu0 }
 0x24d   : > { %v2640_v62 = vadd.f32 %v2620_v3, %v2445_v50 }
 0x24e   : > { %v2428_v20 = vpop.f32.mrf.mxu0 }
 0x24f   : > { %v2446_v45 = vadd.f32 %v2428_v20, %v5561_v36 }
 0x250   : > { %v4071_v27 = vpop.f32.mrf.mxu0 }
 0x251   : > { %v2641_v40 = vadd.f32 %v5565_v2, %v2446_v45 }
 0x252   : > { %v2433_v26 = vpop.f32.mrf.mxu0 }
 0x253   : > { %v2447_v37 = vadd.f32 %v2433_v26, %v2276_v10 }
 0x254   : > { %v4074_v41 = vpop.f32.mrf.mxu0 }
 0x255   : > { %v5567_v56 = vadd.f32 %v2628_v52, %v2447_v37 }
 0x256   : > { %v2436_v22 = vpop.f32.mrf.mxu0 }
 0x258   : > { %v4075_v60 = vpop.f32.mrf.mxu0 }
 0x25a   : > { %v2765_v9 = vpop.f32.mrf.mxu0 }
 0x25b   : > { %v2803_v24 = vadd.f32 %v2765_v9, %v2634_v14 }
 0x25c   : > { %v4130_v5 = vpop.f32.mrf.mxu0 }
 0x25d   : > { %v2816_v1 = vmul.f32 %v5573_v32, %v2803_v24 }
 0x25e   : > { %v2768_v46 = vpop.f32.mrf.mxu0 }
 0x25f   : > { %v2804_v21 = vadd.f32 %v2768_v46, %v2635_v25  ;;  %v2829_v58 = vadd.f32 %v5580_v18, %v2816_v1 }
 0x260   : > { %v4131_v23 = vpop.f32.mrf.mxu0 }
 0x261   : > { %v2817_v61 = vmul.f32 %v5573_v32, %v2804_v21  ;;  %v2838_v11 = vmax.f32 %v2829_v58, 0.0 }
 0x262   : > { %v2773_v57 = vpop.f32.mrf.mxu0 }
 0x263   : > { %v2830_v10 = vadd.f32 %v5580_v18, %v2817_v61  ;;  %v2805_v44 = vadd.f32 %v2773_v57, %v2636_v35  ;;  %v2639_v35 = vadd.f32 %v5563_v19, %v2444_v13 }
 0x264   : > { %v4134_v17 = vpop.f32.mrf.mxu0 }
 0x265   : > { %v2839_v0 = vmax.f32 %v2830_v10, 0.0  ;;  %v2818_v29 = vmul.f32 %v5573_v32, %v2805_v44 }
 0x266   : > { %v2776_v3 = vpop.f32.mrf.mxu0 }
 0x267   : > { %v2847_v55 = vpack.c.bf16 %v2839_v0, %v2838_v11  ;;  %v2806_v34 = vadd.f32 %v2776_v3, %v2637_v48  ;;  %v2831_v47 = vadd.f32 %v5580_v18, %v2818_v29 }
 0x268   : > { %v4135_v14 = vpop.f32.mrf.mxu0 }
 0x269   : > { %v2819_v31 = vmul.f32 %v5573_v32, %v2806_v34  ;;  %4165 = vmatmul.mubr.bf16.vlgmr.msra.gmra.mxu1 %v2847_v55  ;;  %v2840_v49 = vmax.f32 %v2831_v47, 0.0  ;;  %v5621_v47 = vld [vmem:[%s5701_s7 + $0x6] ss:$0 sm:$0xff] }
 0x26a   : > { %v2781_v39 = vpop.f32.mrf.mxu0  ;;  %4168 = vmatprep.mubr.msk.bf16.mxu1 %vm4347_vm2, %v4346_v42 }
 0x26b   : > { %v2832_v28 = vadd.f32 %v5580_v18, %v2819_v31  ;;  %v2807_v16 = vadd.f32 %v2781_v39, %v2638_v4  ;;  %v5627_v39 = vld [vmem:[%s5701_s7 + $0x7] ss:$0 sm:$0xff] }
 0x26c   : > { %v4138_v52 = vpop.f32.mrf.mxu0 }
 0x26d   : > { %v2841_v15 = vmax.f32 %v2832_v28, 0.0  ;;  %v2820_v30 = vmul.f32 %v5573_v32, %v2807_v16  ;;  %v5632_v28 = vld [vmem:[%s5701_s7 + $0x4] ss:$0 sm:$0xff]  ;;  %v5637_v16 = vld [vmem:[%s5701_s7 + $0x5] ss:$0 sm:$0xff] }
 0x26e   : > { %v2784_v63 = vpop.f32.mrf.mxu0 }
 0x26f   : > { %v2848_v51 = vpack.c.bf16 %v2841_v15, %v2840_v49  ;;  %v2808_v59 = vadd.f32 %v2784_v63, %v2639_v35  ;;  %v2833_v53 = vadd.f32 %v5580_v18, %v2820_v30 }
 0x270   : > { %v4139_v6 = vpop.f32.mrf.mxu0 }
 0x271   : > { %v2821_v12 = vmul.f32 %v5573_v32, %v2808_v59  ;;  %4169 = vmatmul.mubr.bf16.gmra.mxu1 %v2848_v51  ;;  %v2842_v19 = vmax.f32 %v2833_v53, 0.0 }
 0x272   : > { %v2789_v7 = vpop.f32.mrf.mxu0  ;;  %4172 = vmatprep.mubr.msk.bf16.mxu1 %vm4347_vm2, %v4346_v42 }
 0x273   : > { %v2834_v4 = vadd.f32 %v5580_v18, %v2821_v12  ;;  %v2809_v33 = vadd.f32 %v2789_v7, %v2640_v62 }
 0x274   : > { %v4142_v54 = vpop.f32.mrf.mxu0 }
 0x275   : > { %v2843_v38 = vmax.f32 %v2834_v4, 0.0  ;;  %v2822_v50 = vmul.f32 %v5573_v32, %v2809_v33 }
 0x276   : > { %v2792_v36 = vpop.f32.mrf.mxu0 }
 0x277   : > { %v2849_v20 = vpack.c.bf16 %v2843_v38, %v2842_v19  ;;  %v2810_v27 = vadd.f32 %v2792_v36, %v2641_v40  ;;  %v2835_v37 = vadd.f32 %v5580_v18, %v2822_v50 }
 0x278   : > { %v4143_v26 = vpop.f32.mrf.mxu0 }
 0x279   : > { %v2823_v41 = vmul.f32 %v5573_v32, %v2810_v27  ;;  %4173 = vmatmul.mubr.bf16.gmra.mxu1 %v2849_v20  ;;  %v2844_v9 = vmax.f32 %v2835_v37, 0.0 }
 0x27a   : > { %v2797_v22 = vpop.f32.mrf.mxu0  ;;  %4176 = vmatprep.mubr.msk.bf16.mxu1 %vm4347_vm2, %v4346_v42 }
 0x27b   : > { %v2836_v62 = vadd.f32 %v5580_v18, %v2823_v41  ;;  %v2811_v60 = vadd.f32 %v2797_v22, %v5567_v56 }
 0x27c   : > { %v4146_v8 = vpop.f32.mrf.mxu0 }
 0x27d   : > { %v2845_v2 = vmax.f32 %v2836_v62, 0.0  ;;  %v2824_v24 = vmul.f32 %v5573_v32, %v2811_v60 }
 0x27e   : > { %v2800_v5 = vpop.f32.mrf.mxu0 }
 0x27f   : > { %v2850_v1 = vpack.c.bf16 %v2845_v2, %v2844_v9  ;;  %v2837_v25 = vadd.f32 %v5580_v18, %v2824_v24 }
 0x280   : > { %v4147_v46 = vpop.f32.mrf.mxu0 }
 0x281   : > { %4177 = vmatmul.mubr.bf16.gmra.mxu1 %v2850_v1  ;;  %v2846_v21 = vmax.f32 %v2837_v25, 0.0 }
 0x282   : > { %4180 = vmatprep.mubr.msk.bf16.mxu1 %vm4347_vm2, %v4346_v42 }
 0x283   : > { %v2851_v23 = vpack.c.bf16 %v2846_v21, %v2846_v21 }
 0x284   : > { %v3099_v43 = vpop.f32.mrf.mxu0 }
 0x285   : > { %v3141_v31 = vmul.f32 %v5621_v47, %v3099_v43 }
 0x286   : > { %v4188_v58 = vpop.f32.mrf.mxu0 }
 0x287   : > { %v3154_v49 = vadd.f32 %v5627_v39, %v3141_v31 }
 0x288   : > { %v3102_v56 = vpop.f32.mrf.mxu0 }
 0x289   : > { %4181 = vmatmul.mubr.bf16.gmra.mxu1 %v2851_v23  ;;  %v3142_v35 = vmul.f32 %v5621_v47, %v3102_v56 }
 0x28a   : > { %v4189_v61 = vpop.f32.mrf.mxu0 }
 0x28b   : > { %v3155_v12 = vadd.f32 %v5627_v39, %v3142_v35 }
 0x28c   : > { %v3107_v57 = vpop.f32.mrf.mxu0 }
 0x28d   : > { %v3143_v6 = vmul.f32 %v5621_v47, %v3107_v57 }
 0x28e   : > { %v4192_v10 = vpop.f32.mrf.mxu0 }
 0x28f   : > { %v3156_v54 = vadd.f32 %v5627_v39, %v3143_v6 }
 0x290   : > { %v3110_v44 = vpop.f32.mrf.mxu0 }
 0x291   : > { %v3144_v36 = vmul.f32 %v5621_v47, %v3110_v44 }
 0x292   : > { %v4193_v32 = vpop.f32.mrf.mxu0 }
 0x293   : > { %v3157_v62 = vadd.f32 %v5627_v39, %v3144_v36 }
 0x2ae   : > { %v3115_v17 = vpop.f32.mrf.mxu0 }
 0x2af   : > { %v3145_v37 = vmul.f32 %v5621_v47, %v3115_v17 }
 0x2b0   : > { %v4196_v11 = vpop.f32.mrf.mxu0 }
 0x2b1   : > { %v3158_v2 = vadd.f32 %v5627_v39, %v3145_v37 }
 0x2b2   : > { %v3118_v0 = vpop.f32.mrf.mxu0 }
 0x2b3   : > { %v3146_v46 = vmul.f32 %v5621_v47, %v3118_v0 }
 0x2b4   : > { %v4197_v18 = vpop.f32.mrf.mxu0 }
 0x2b5   : > { %v3159_v57 = vadd.f32 %v5627_v39, %v3146_v46 }
 0x2b6   : > { %v3123_v29 = vpop.f32.mrf.mxu0 }
 0x2b7   : > { %v3147_v58 = vmul.f32 %v5621_v47, %v3123_v29 }
 0x2b8   : > { %v4200_v48 = vpop.f32.mrf.mxu0 }
 0x2b9   : > { %v3160_v17 = vadd.f32 %v5627_v39, %v3147_v58 }
 0x2ba   : > { %v5614_v3 = vpop.f32.mrf.mxu0 }
 0x2bb   : > { %v3148_v29 = vmul.f32 %v5621_v47, %v5614_v3 }
 0x2bc   : > { %v4201_v42 = vpop.f32.mrf.mxu0 }
 0x2be   : > { %v5616_v55 = vpop.f32.mrf.mxu0 }
 0x2c0   : > { %v4204_v34 = vpop.f32.mrf.mxu0 }
 0x2c2   : > { %v3134_v14 = vpop.f32.mrf.mxu0 }
 0x2c4   : > { %v4205_v13 = vpop.f32.mrf.mxu0 }
 0x2c5   : > { %v3149_v13 = vmul.f32 %v5621_v47, %v5616_v55 }
 0x2c7   : > { %v3162_v3 = vadd.f32 %v5627_v39, %v3149_v13 }
 0x329   : > { %v2950_v52 = vpop.f32.mrf.mxu1 }
 0x32a   : > { %v2992_v15 = vmul.f32 %v5632_v28, %v2950_v52 }
 0x32b   : > { %v4166_v30 = vpop.f32.mrf.mxu1 }
 0x32c   : > { %v3005_v63 = vadd.f32 %v5637_v16, %v2992_v15 }
 0x32d   : > { %v2953_v51 = vpop.f32.mrf.mxu1 }
 0x32e   : > { %v3163_v59 = vadd.f32 %v3154_v49, %v3005_v63  ;;  %v2993_v45 = vmul.f32 %v5632_v28, %v2953_v51  ;;  %v3161_v49 = vadd.f32 %v5627_v39, %v3148_v29 }
 0x32f   : > { %v4167_v53 = vpop.f32.mrf.mxu1 }
 0x330   : > { %v3172_v7 = vmax.f32 %v3163_v59, 0.0  ;;  %v3006_v4 = vadd.f32 %v5637_v16, %v2993_v45 }
 0x331   : > { %v2958_v33 = vpop.f32.mrf.mxu1 }
 0x332   : > { %3181 = vst [vmem:[%s5649_s29] sm:$0xff] %v3172_v7  ;;  %v3164_v19 = vadd.f32 %v3155_v12, %v3006_v4  ;;  %v2994_v38 = vmul.f32 %v5632_v28, %v2958_v33 }
 0x333   : > { %v4170_v50 = vpop.f32.mrf.mxu1 }
 0x334   : > { %v3173_v40 = vmax.f32 %v3164_v19, 0.0  ;;  %v3007_v20 = vadd.f32 %v5637_v16, %v2994_v38 }
 0x335   : > { %v2961_v27 = vpop.f32.mrf.mxu1 }
 0x336   : > { %3182 = vst [vmem:[%s5649_s29 + $0x8] sm:$0xff] %v3173_v40  ;;  %v3165_v26 = vadd.f32 %v3156_v54, %v3007_v20  ;;  %v2995_v41 = vmul.f32 %v5632_v28, %v2961_v27 }
 0x337   : > { %v4171_v22 = vpop.f32.mrf.mxu1 }
 0x338   : > { %v3174_v60 = vmax.f32 %v3165_v26, 0.0  ;;  %v3008_v8 = vadd.f32 %v5637_v16, %v2995_v41 }
 0x339   : > { %v2966_v9 = vpop.f32.mrf.mxu1 }
 0x33a   : > { %3183 = vst [vmem:[%s5649_s29 + $0x10] sm:$0xff] %v3174_v60  ;;  %v3166_v24 = vadd.f32 %v3157_v62, %v3008_v8  ;;  %v2996_v5 = vmul.f32 %v5632_v28, %v2966_v9 }
 0x33b   : > { %v4174_v1 = vpop.f32.mrf.mxu1 }
 0x33c   : > { %v3175_v25 = vmax.f32 %v3166_v24, 0.0  ;;  %v3009_v21 = vadd.f32 %v5637_v16, %v2996_v5 }
 0x33d   : > { %v2969_v23 = vpop.f32.mrf.mxu1 }
 0x33e   : > { %3184 = vst [vmem:[%s5649_s29 + $0x18] sm:$0xff] %v3175_v25  ;;  %v3167_v43 = vadd.f32 %v3158_v2, %v3009_v21  ;;  %v2997_v56 = vmul.f32 %v5632_v28, %v2969_v23 }
 0x33f   : > { %v4175_v61 = vpop.f32.mrf.mxu1 }
 0x340   : > { %v3176_v10 = vmax.f32 %v3167_v43, 0.0  ;;  %v3010_v44 = vadd.f32 %v5637_v16, %v2997_v56 }
 0x341   : > { %v2974_v32 = vpop.f32.mrf.mxu1 }
 0x342   : > { %3185 = vst [vmem:[%s5649_s29 + $0x20] sm:$0xff] %v3176_v10  ;;  %v3168_v11 = vadd.f32 %v3159_v57, %v3010_v44  ;;  %v2998_v0 = vmul.f32 %v5632_v28, %v2974_v32 }
 0x343   : > { %v4178_v18 = vpop.f32.mrf.mxu1 }
 0x344   : > { %v3177_v48 = vmax.f32 %v3168_v11, 0.0  ;;  %v3011_v42 = vadd.f32 %v5637_v16, %v2998_v0 }
 0x345   : > { %v2977_v34 = vpop.f32.mrf.mxu1 }
 0x346   : > { %3186 = vst [vmem:[%s5649_s29 + $0x28] sm:$0xff] %v3177_v48  ;;  %v3169_v14 = vadd.f32 %v3160_v17, %v3011_v42  ;;  %v2999_v31 = vmul.f32 %v5632_v28, %v2977_v34 }
 0x347   : > { %v4179_v52 = vpop.f32.mrf.mxu1 }
 0x348   : > { %v3178_v15 = vmax.f32 %v3169_v14, 0.0  ;;  %v3012_v30 = vadd.f32 %v5637_v16, %v2999_v31 }
 0x349   : > { %v2982_v35 = vpop.f32.mrf.mxu1 }
 0x34a   : > { %3187 = vst [vmem:[%s5649_s29 + $0x30] sm:$0xff] %v3178_v15  ;;  %v3170_v63 = vadd.f32 %v3161_v49, %v3012_v30  ;;  %v3000_v51 = vmul.f32 %v5632_v28, %v2982_v35 }
 0x34b   : > { %v4182_v59 = vpop.f32.mrf.mxu1 }
 0x34c   : > { %v3179_v6 = vmax.f32 %v3170_v63, 0.0  ;;  %v3013_v55 = vadd.f32 %v5637_v16, %v3000_v51 }
 0x34d   : > { %v2985_v47 = vpop.f32.mrf.mxu1 }
 0x34e   : > { %3188 = vst [vmem:[%s5649_s29 + $0x38] sm:$0xff] %v3179_v6  ;;  %v3171_v45 = vadd.f32 %v3162_v3, %v3013_v55 }
 0x34f   : > { %v4183_v53 = vpop.f32.mrf.mxu1 }
 0x350   : > { %v3180_v12 = vmax.f32 %v3171_v45, 0.0 }
 0x352   : > { %3189 = vst [vmem:[%s5649_s29 + $0x40] sm:$0x7f] %v3180_v12 }
 0x353 PF: > { %s18_s27 = sadd.s32 1, %s4343_s27  }
 0x354   : > { %p15_p4 = scmp.ge.s32.totalorder %s18_s27, 4  }
 0x356   :  { %17 = sbr.rel (!%p15_p4) target bundleno = 1 (0x1), region = 99 }

</bundles_post_ra>
